<compile_context>
chip_gen: v5e
topology: v5e:2x2
jax: 0.10.0
libtpu: 0.0.40
codegen_flags: <defaults>
</compile_context>

<pallas_src>
import jax
import jax.numpy as jnp
from jax.experimental import pallas as pl
from jax.experimental.pallas import tpu as pltpu

# ---- synthetic stand-in config (real esm1_t12: vocab=33, embed_dim=768, 12 layers) ----
B, L, D, H, NLAYERS, VOCAB = 2, 8, 128, 4, 2, 33
DH = D // H
FFN = 4 * D

# rows of the packed per-layer vector array `vecs`
_BO, _B2, _LN1G, _LN1B, _LN2G, _LN2B, _FING, _FINB = range(8)


def _layer_norm(x, g, b, eps=1e-5):
    mu = jnp.mean(x, axis=-1, keepdims=True)
    xc = x - mu
    var = jnp.mean(xc * xc, axis=-1, keepdims=True)
    return xc * jax.lax.rsqrt(var + eps) * g + b


# ------------- fused Pallas kernel: all layers + final LN + mean pool, one sequence per block -------------
def fused_encoder_kernel(x_hbm, wqkv_ref, bqkv_ref, wo_ref, w1_ref, b1_ref, w2_ref, vecs_ref,
                         rep_ref, pool_ref, x_scr, load_sem):
    b = pl.program_id(0)          # batch (sequence) index -> "parallel"
    layer = pl.program_id(1)      # layer index            -> "arbitrary"

    @pl.when(layer == 0)
    def _load_embeddings():
        # Embeddings live in HBM (pl.ANY); copy this sequence's (L, D) slab into the resident scratch once.
        cp = pltpu.make_async_copy(x_hbm.at[b], x_scr, load_sem)
        cp.start()
        cp.wait()

    x = x_scr[...]                                       # (L, D) f32, resident across layers
    vecs = vecs_ref[0]                                   # (8, D) packed per-layer vectors

    # ---- multi-head self-attention (pre-LN), fused lane-dense QKV ----
    h1 = _layer_norm(x, vecs[_LN1G:_LN1G + 1], vecs[_LN1B:_LN1B + 1])
    qkv = jnp.dot(h1.astype(jnp.bfloat16), wqkv_ref[0],
                  preferred_element_type=jnp.float32) + bqkv_ref[0]      # (L, 3D), one MXU call

    def _heads(x2d):                                     # (L, D) -> (H, L, DH) head-major
        return jnp.transpose(x2d.reshape(L, H, DH), (1, 0, 2))

    q = _heads(qkv[:, 0 * D:1 * D]).astype(jnp.bfloat16)
    k = _heads(qkv[:, 1 * D:2 * D]).astype(jnp.bfloat16)
    v = _heads(qkv[:, 2 * D:3 * D]).astype(jnp.bfloat16)

    # Per-sequence attention: no cross-sequence mask needed.
    s = jnp.einsum('hqd,hkd->hqk', q, k, preferred_element_type=jnp.float32) * (DH ** -0.5)
    # TODO(synk): real ESM also masks padding tokens; synthetic inputs here are full-length.
    m = jnp.max(s, axis=-1, keepdims=True)
    e = jnp.exp(s - m)
    p = e * pl.reciprocal(jnp.sum(e, axis=-1, keepdims=True), approx=True)   # EUP reciprocal

    ctx = jnp.einsum('hqk,hkd->hqd', p.astype(jnp.bfloat16), v,
                     preferred_element_type=jnp.float32)                     # (H, L, DH)
    ctx2d = jnp.transpose(ctx, (1, 0, 2)).reshape(L, D)                      # merge heads -> lane-dense
    attn = jnp.dot(ctx2d.astype(jnp.bfloat16), wo_ref[0],
                   preferred_element_type=jnp.float32)                       # single K=D matmul
    x = x + attn + vecs[_BO:_BO + 1]

    # ---- feed-forward (pre-LN, GELU) ----
    h2 = _layer_norm(x, vecs[_LN2G:_LN2G + 1], vecs[_LN2B:_LN2B + 1])
    f = jnp.dot(h2.astype(jnp.bfloat16), w1_ref[0], preferred_element_type=jnp.float32) + b1_ref[0]
    # TODO(synk): PyTorch/ESM use exact erf GELU; tanh approximation used for guaranteed lowering.
    f = jax.nn.gelu(f)
    f = jnp.dot(f.astype(jnp.bfloat16), w2_ref[0], preferred_element_type=jnp.float32) + vecs[_B2:_B2 + 1]
    x = x + f

    x_scr[...] = x                                       # carry activation to next layer

    # ---- last layer: final LN -> residue representations + sequence mean pool ----
    @pl.when(layer == pl.num_programs(1) - 1)
    def _finalize():
        rep = _layer_norm(x, vecs[_FING:_FING + 1], vecs[_FINB:_FINB + 1])
        rep_ref[...] = rep.reshape(1, L, D)
        # Permute -> AdaptiveAvgPool1d(1) -> Squeeze(-1)  ==  mean over the sequence axis
        pool_ref[...] = jnp.mean(rep, axis=0).reshape(1, 1, D)


def esm_encode(x_emb, params):
    in_specs = (
        pl.BlockSpec(memory_space=pl.ANY),                          # token+pos embeddings (raw HBM)
        pl.BlockSpec((1, D, 3 * D), lambda b, l: (l, 0, 0)),        # fused wq|wk|wv  (bf16, lane-dense)
        pl.BlockSpec((1, 1, 3 * D), lambda b, l: (l, 0, 0)),        # fused qkv bias  (1, 384)
        pl.BlockSpec((1, D, D), lambda b, l: (l, 0, 0)),            # wo              (bf16)
        pl.BlockSpec((1, D, FFN), lambda b, l: (l, 0, 0)),          # w1              (bf16)
        pl.BlockSpec((1, 1, FFN), lambda b, l: (l, 0, 0)),          # b1              (1, 512)
        pl.BlockSpec((1, FFN, D), lambda b, l: (l, 0, 0)),          # w2              (bf16)
        pl.BlockSpec((1, 8, D), lambda b, l: (l, 0, 0)),            # packed small vectors
    )
    out_specs = (
        pl.BlockSpec((1, L, D), lambda b, l: (b, 0, 0)),            # residue_feature
        pl.BlockSpec((1, 1, D), lambda b, l: (b, 0, 0)),            # protein_feature (squeezed outside)
    )
    rep, pooled = pl.pallas_call(
        fused_encoder_kernel,
        out_shape=(jax.ShapeDtypeStruct((B, L, D), jnp.float32),
                   jax.ShapeDtypeStruct((B, 1, D), jnp.float32)),
        grid_spec=pltpu.PrefetchScalarGridSpec(
            num_scalar_prefetch=0,
            grid=(B, NLAYERS),
            in_specs=in_specs,
            out_specs=out_specs,
            scratch_shapes=[pltpu.VMEM((L, D), jnp.float32),        # resident activation
                            pltpu.SemaphoreType.DMA(())],           # embedding-load semaphore
        ),
        compiler_params=pltpu.CompilerParams(
            dimension_semantics=("parallel", "arbitrary"),          # batch across cores, layers serial
            vmem_limit_bytes=64 * 1024 * 1024),
    )(x_emb, params["wqkv"], params["bqkv"], params["wo"],
      params["w1"], params["b1"], params["w2"], params["vecs"])
    return rep, pooled[:, 0, :]


# ------------- parameter init (deterministic, synthetic, pre-packed lane-dense layouts) -------------
def init_params(key):
    keys = jax.random.split(key, 2 + NLAYERS)
    params = {
        "emb": jax.random.normal(keys[0], (VOCAB, D), jnp.float32) * 0.02,
        "pos": jax.random.normal(keys[1], (L, D), jnp.float32) * 0.02,
    }

    wqkv, bqkv, wo, w1, b1, w2, vecs = ([] for _ in range(7))
    for i in range(NLAYERS):
        lk = jax.random.split(keys[2 + i], 6)
        wq = jax.random.normal(lk[0], (D, D), jnp.float32) * 0.05
        wk = jax.random.normal(lk[1], (D, D), jnp.float32) * 0.05
        wv = jax.random.normal(lk[2], (D, D), jnp.float32) * 0.05
        wqkv.append(jnp.concatenate([wq, wk, wv], axis=1))            # (D, 3D) fused, lane-dense
        bqkv.append(jnp.zeros((1, 3 * D), jnp.float32))               # (1, 384) lane-dense
        wo.append(jax.random.normal(lk[3], (D, D), jnp.float32) * 0.05)
        w1.append(jax.random.normal(lk[4], (D, FFN), jnp.float32) * 0.05)
        b1.append(jnp.zeros((1, FFN), jnp.float32))
        w2.append(jax.random.normal(lk[5], (FFN, D), jnp.float32) * 0.05)
        v = jnp.zeros((8, D), jnp.float32)
        v = v.at[_LN1G].set(1.0).at[_LN2G].set(1.0).at[_FING].set(1.0)   # LN gammas = 1
        vecs.append(v)

    params.update(
        wqkv=jnp.stack(wqkv).astype(jnp.bfloat16),    # MXU operands stored in bf16
        bqkv=jnp.stack(bqkv),
        wo=jnp.stack(wo).astype(jnp.bfloat16),
        w1=jnp.stack(w1).astype(jnp.bfloat16),
        b1=jnp.stack(b1),
        w2=jnp.stack(w2).astype(jnp.bfloat16),
        vecs=jnp.stack(vecs),
    )
    return params


# ------------- forward (matches SequenceView.forward semantics) -------------
@jax.jit
def sequence_view_forward(tokens, params):
    # token + positional embedding gather stays in plain JAX (tiny vocab; no Pallas gather win)
    x = params["emb"][tokens] + params["pos"][None, :, :]          # (B, L, D)
    rep, pooled = esm_encode(x, params)
    return {"protein_feature": pooled, "residue_feature": rep}


if __name__ == "__main__":
    key = jax.random.PRNGKey(0)
    pkey, tkey = jax.random.split(key)
    params = init_params(pkey)
    tokens = jax.random.randint(tkey, (B, L), 0, VOCAB, dtype=jnp.int32)   # input.long() analogue

    out = sequence_view_forward(tokens, params)
    jax.block_until_ready(out)

    assert out["residue_feature"].shape == (B, L, D)
    assert out["protein_feature"].shape == (B, D)
    assert bool(jnp.all(jnp.isfinite(out["residue_feature"])))
    assert bool(jnp.all(jnp.isfinite(out["protein_feature"])))
    print("KERNEL_OK")
</pallas_src>

<mosaic_0001>
module attributes {stable_mosaic.version = 11 : i64} {
  func.func @fused_encoder_kernel(%arg0: i32, %arg1: i32, %arg2: memref<2x8x128xf32, #tpu.memory_space<any>>, %arg3: memref<1x128x384xbf16, #tpu.memory_space<vmem>>, %arg4: memref<1x1x384xf32, #tpu.memory_space<vmem>>, %arg5: memref<1x128x128xbf16, #tpu.memory_space<vmem>>, %arg6: memref<1x128x512xbf16, #tpu.memory_space<vmem>>, %arg7: memref<1x1x512xf32, #tpu.memory_space<vmem>>, %arg8: memref<1x512x128xbf16, #tpu.memory_space<vmem>>, %arg9: memref<1x8x128xf32, #tpu.memory_space<vmem>>, %arg10: memref<1x8x128xf32, #tpu.memory_space<vmem>>, %arg11: memref<1x1x128xf32, #tpu.memory_space<vmem>>, %arg12: memref<8x128xf32, #tpu.memory_space<vmem>>, %arg13: memref<!tpu.dma_semaphore, #tpu.memory_space<semaphore_mem>>) attributes {dimension_semantics = [#tpu.dimension_semantics<parallel>, #tpu.dimension_semantics<arbitrary>], iteration_bounds = array<i64: 2, 2>, scalar_prefetch = 0 : i64, scratch_operands = 2 : i64, tpu.core_type = #tpu.core_type<tc>, window_params = [{}, {transform_indices = @transform_1, window_bounds = array<i64: 1, 128, 384>}, {transform_indices = @transform_2, window_bounds = array<i64: 1, 1, 384>}, {transform_indices = @transform_3, window_bounds = array<i64: 1, 128, 128>}, {transform_indices = @transform_4, window_bounds = array<i64: 1, 128, 512>}, {transform_indices = @transform_5, window_bounds = array<i64: 1, 1, 512>}, {transform_indices = @transform_6, window_bounds = array<i64: 1, 512, 128>}, {transform_indices = @transform_7, window_bounds = array<i64: 1, 8, 128>}, {transform_indices = @transform_8, window_bounds = array<i64: 1, 8, 128>}, {transform_indices = @transform_9, window_bounds = array<i64: 1, 1, 128>}]} {
    %c0_i32 = arith.constant 0 : i32
    %0 = arith.cmpi eq, %arg1, %c0_i32 : i32
    %1 = arith.extui %0 : i1 to i32
    %c0_i32_0 = arith.constant 0 : i32
    %2 = arith.cmpi ne, %1, %c0_i32_0 : i32
    scf.if %2 {
      %c0_i32_48 = arith.constant 0 : i32
      %c0_i32_49 = arith.constant 0 : i32
      %128 = tpu.memref_slice %arg2[%arg0, %c0_i32_48, %c0_i32_49] : memref<2x8x128xf32, #tpu.memory_space<any>> -> memref<1x8x128xf32, #tpu.memory_space<any>>
      %129 = tpu.memref_squeeze %128 : memref<1x8x128xf32, #tpu.memory_space<any>> -> memref<8x128xf32, #tpu.memory_space<any>>
      tpu.enqueue_dma source(%129 : memref<8x128xf32, #tpu.memory_space<any>>) target(%arg12 : memref<8x128xf32, #tpu.memory_space<vmem>>) target_semaphore(%arg13 : memref<!tpu.dma_semaphore, #tpu.memory_space<semaphore_mem>>)
      %c0_i32_50 = arith.constant 0 : i32
      %c0_i32_51 = arith.constant 0 : i32
      %130 = tpu.memref_slice %arg2[%arg0, %c0_i32_50, %c0_i32_51] : memref<2x8x128xf32, #tpu.memory_space<any>> -> memref<1x8x128xf32, #tpu.memory_space<any>>
      %131 = tpu.memref_squeeze %130 : memref<1x8x128xf32, #tpu.memory_space<any>> -> memref<8x128xf32, #tpu.memory_space<any>>
      tpu.wait_dma2 semaphore(%arg13 : memref<!tpu.dma_semaphore, #tpu.memory_space<semaphore_mem>>) src(%131 : memref<8x128xf32, #tpu.memory_space<any>>) dst(%arg12 : memref<8x128xf32, #tpu.memory_space<vmem>>)
    } else {
    }
    %c0 = arith.constant 0 : index
    %c0_1 = arith.constant 0 : index
    %3 = vector.load %arg12[%c0, %c0_1] : memref<8x128xf32, #tpu.memory_space<vmem>>, vector<8x128xf32>
    %c0_2 = arith.constant 0 : index
    %c0_3 = arith.constant 0 : index
    %c0_4 = arith.constant 0 : index
    %4 = vector.load %arg9[%c0_2, %c0_3, %c0_4] : memref<1x8x128xf32, #tpu.memory_space<vmem>>, vector<1x8x128xf32>
    %5 = vector.shape_cast %4 : vector<1x8x128xf32> to vector<8x128xf32>
    %6 = vector.extract_strided_slice %5 {offsets = [2, 0], sizes = [1, 128], strides = [1, 1]} : vector<8x128xf32> to vector<1x128xf32>
    %7 = vector.extract_strided_slice %5 {offsets = [3, 0], sizes = [1, 128], strides = [1, 1]} : vector<8x128xf32> to vector<1x128xf32>
    %cst = arith.constant dense<0.000000e+00> : vector<8xf32>
    %8 = vector.multi_reduction <add>, %3, %cst [1] : vector<8x128xf32> to vector<8xf32>
    %9 = vector.shape_cast %8 : vector<8xf32> to vector<8x1xf32>
    %cst_5 = arith.constant 1.280000e+02 : f32
    %10 = vector.broadcast %cst_5 : f32 to vector<8x1xf32>
    %11 = arith.divf %9, %10 : vector<8x1xf32>
    %12 = vector.broadcast %11 : vector<8x1xf32> to vector<8x128xf32>
    %13 = arith.subf %3, %12 : vector<8x128xf32>
    %14 = arith.mulf %13, %13 : vector<8x128xf32>
    %cst_6 = arith.constant dense<0.000000e+00> : vector<8xf32>
    %15 = vector.multi_reduction <add>, %14, %cst_6 [1] : vector<8x128xf32> to vector<8xf32>
    %16 = vector.shape_cast %15 : vector<8xf32> to vector<8x1xf32>
    %cst_7 = arith.constant 1.280000e+02 : f32
    %17 = vector.broadcast %cst_7 : f32 to vector<8x1xf32>
    %18 = arith.divf %16, %17 : vector<8x1xf32>
    %cst_8 = arith.constant 9.99999974E-6 : f32
    %19 = vector.broadcast %cst_8 : f32 to vector<8x1xf32>
    %20 = arith.addf %18, %19 : vector<8x1xf32>
    %21 = math.rsqrt %20 : vector<8x1xf32>
    %22 = vector.broadcast %21 : vector<8x1xf32> to vector<8x128xf32>
    %23 = arith.mulf %13, %22 : vector<8x128xf32>
    %24 = vector.broadcast %6 : vector<1x128xf32> to vector<8x128xf32>
    %25 = arith.mulf %23, %24 : vector<8x128xf32>
    %26 = vector.broadcast %7 : vector<1x128xf32> to vector<8x128xf32>
    %27 = arith.addf %25, %26 : vector<8x128xf32>
    %28 = arith.truncf %27 : vector<8x128xf32> to vector<8x128xbf16>
    %c0_9 = arith.constant 0 : index
    %c0_10 = arith.constant 0 : index
    %c0_11 = arith.constant 0 : index
    %29 = vector.load %arg3[%c0_9, %c0_10, %c0_11] : memref<1x128x384xbf16, #tpu.memory_space<vmem>>, vector<1x128x384xbf16>
    %30 = vector.shape_cast %29 : vector<1x128x384xbf16> to vector<128x384xbf16>
    %cst_12 = arith.constant dense<0.000000e+00> : vector<8x384xf32>
    %31 = tpu.matmul %28, %30, %cst_12 {dimension_numbers = #tpu.dot_dimension_numbers<[1], [0], [0], [1], [0, 0, 1, 1], [], []>} : vector<8x128xbf16>, vector<128x384xbf16>, vector<8x384xf32> -> vector<8x384xf32>
    %c0_13 = arith.constant 0 : index
    %c0_14 = arith.constant 0 : index
    %c0_15 = arith.constant 0 : index
    %32 = vector.load %arg4[%c0_13, %c0_14, %c0_15] : memref<1x1x384xf32, #tpu.memory_space<vmem>>, vector<1x1x384xf32>
    %33 = vector.shape_cast %32 : vector<1x1x384xf32> to vector<1x384xf32>
    %34 = vector.broadcast %33 : vector<1x384xf32> to vector<8x384xf32>
    %35 = arith.addf %31, %34 : vector<8x384xf32>
    %36 = vector.extract_strided_slice %35 {offsets = [0, 0], sizes = [8, 128], strides = [1, 1]} : vector<8x384xf32> to vector<8x128xf32>
    %37 = vector.shape_cast %36 : vector<8x128xf32> to vector<8x4x32xf32>
    %38 = tpu.transpose %37, [1, 0, 2] : vector<8x4x32xf32> -> vector<4x8x32xf32>
    %39 = arith.truncf %38 : vector<4x8x32xf32> to vector<4x8x32xbf16>
    %40 = vector.extract_strided_slice %35 {offsets = [0, 128], sizes = [8, 128], strides = [1, 1]} : vector<8x384xf32> to vector<8x128xf32>
    %41 = vector.shape_cast %40 : vector<8x128xf32> to vector<8x4x32xf32>
    %42 = tpu.transpose %41, [1, 0, 2] : vector<8x4x32xf32> -> vector<4x8x32xf32>
    %43 = arith.truncf %42 : vector<4x8x32xf32> to vector<4x8x32xbf16>
    %44 = vector.extract_strided_slice %35 {offsets = [0, 256], sizes = [8, 128], strides = [1, 1]} : vector<8x384xf32> to vector<8x128xf32>
    %45 = vector.shape_cast %44 : vector<8x128xf32> to vector<8x4x32xf32>
    %46 = tpu.transpose %45, [1, 0, 2] : vector<8x4x32xf32> -> vector<4x8x32xf32>
    %47 = arith.truncf %46 : vector<4x8x32xf32> to vector<4x8x32xbf16>
    "tpu.trace_start"() <{level = 10 : i32, message = "hqd,hkd->hqk"}> : () -> ()
    %cst_16 = arith.constant dense<0.000000e+00> : vector<4x8x8xf32>
    %48 = tpu.matmul %39, %43, %cst_16 {dimension_numbers = #tpu.dot_dimension_numbers<[2], [2], [1], [1], [0, 0, 0, 1, 1, 1], [0], [0]>} : vector<4x8x32xbf16>, vector<4x8x32xbf16>, vector<4x8x8xf32> -> vector<4x8x8xf32>
    "tpu.trace_stop"() : () -> ()
    %cst_17 = arith.constant 0.176776692 : f32
    %49 = vector.broadcast %cst_17 : f32 to vector<4x8x8xf32>
    %50 = arith.mulf %48, %49 : vector<4x8x8xf32>
    %cst_18 = arith.constant dense<0xFF800000> : vector<4x8xf32>
    %51 = vector.multi_reduction <maximumf>, %50, %cst_18 [2] : vector<4x8x8xf32> to vector<4x8xf32>
    %52 = vector.shape_cast %51 : vector<4x8xf32> to vector<4x8x1xf32>
    %53 = vector.broadcast %52 : vector<4x8x1xf32> to vector<4x8x8xf32>
    %54 = arith.subf %50, %53 : vector<4x8x8xf32>
    %55 = math.exp %54 : vector<4x8x8xf32>
    %cst_19 = arith.constant dense<0.000000e+00> : vector<4x8xf32>
    %56 = vector.multi_reduction <add>, %55, %cst_19 [2] : vector<4x8x8xf32> to vector<4x8xf32>
    %57 = vector.shape_cast %56 : vector<4x8xf32> to vector<4x8x1xf32>
    %58 = tpu.reciprocal %57 {approx = true} : vector<4x8x1xf32> -> vector<4x8x1xf32>
    %59 = vector.broadcast %58 : vector<4x8x1xf32> to vector<4x8x8xf32>
    %60 = arith.mulf %55, %59 : vector<4x8x8xf32>
    %61 = arith.truncf %60 : vector<4x8x8xf32> to vector<4x8x8xbf16>
    "tpu.trace_start"() <{level = 10 : i32, message = "hqk,hkd->hqd"}> : () -> ()
    %cst_20 = arith.constant dense<0.000000e+00> : vector<4x8x32xf32>
    %62 = tpu.matmul %61, %47, %cst_20 {dimension_numbers = #tpu.dot_dimension_numbers<[2], [1], [1], [2], [0, 0, 0, 1, 1, 2], [0], [0]>} : vector<4x8x8xbf16>, vector<4x8x32xbf16>, vector<4x8x32xf32> -> vector<4x8x32xf32>
    "tpu.trace_stop"() : () -> ()
    %63 = tpu.transpose %62, [1, 0, 2] : vector<4x8x32xf32> -> vector<8x4x32xf32>
    %64 = vector.shape_cast %63 : vector<8x4x32xf32> to vector<8x128xf32>
    %65 = arith.truncf %64 : vector<8x128xf32> to vector<8x128xbf16>
    %c0_21 = arith.constant 0 : index
    %c0_22 = arith.constant 0 : index
    %c0_23 = arith.constant 0 : index
    %66 = vector.load %arg5[%c0_21, %c0_22, %c0_23] : memref<1x128x128xbf16, #tpu.memory_space<vmem>>, vector<1x128x128xbf16>
    %67 = vector.shape_cast %66 : vector<1x128x128xbf16> to vector<128x128xbf16>
    %cst_24 = arith.constant dense<0.000000e+00> : vector<8x128xf32>
    %68 = tpu.matmul %65, %67, %cst_24 {dimension_numbers = #tpu.dot_dimension_numbers<[1], [0], [0], [1], [0, 0, 1, 1], [], []>} : vector<8x128xbf16>, vector<128x128xbf16>, vector<8x128xf32> -> vector<8x128xf32>
    %69 = arith.addf %3, %68 : vector<8x128xf32>
    %70 = vector.extract_strided_slice %5 {offsets = [0, 0], sizes = [1, 128], strides = [1, 1]} : vector<8x128xf32> to vector<1x128xf32>
    %71 = vector.broadcast %70 : vector<1x128xf32> to vector<8x128xf32>
    %72 = arith.addf %69, %71 : vector<8x128xf32>
    %73 = vector.extract_strided_slice %5 {offsets = [4, 0], sizes = [1, 128], strides = [1, 1]} : vector<8x128xf32> to vector<1x128xf32>
    %74 = vector.extract_strided_slice %5 {offsets = [5, 0], sizes = [1, 128], strides = [1, 1]} : vector<8x128xf32> to vector<1x128xf32>
    %cst_25 = arith.constant dense<0.000000e+00> : vector<8xf32>
    %75 = vector.multi_reduction <add>, %72, %cst_25 [1] : vector<8x128xf32> to vector<8xf32>
    %76 = vector.shape_cast %75 : vector<8xf32> to vector<8x1xf32>
    %cst_26 = arith.constant 1.280000e+02 : f32
    %77 = vector.broadcast %cst_26 : f32 to vector<8x1xf32>
    %78 = arith.divf %76, %77 : vector<8x1xf32>
    %79 = vector.broadcast %78 : vector<8x1xf32> to vector<8x128xf32>
    %80 = arith.subf %72, %79 : vector<8x128xf32>
    %81 = arith.mulf %80, %80 : vector<8x128xf32>
    %cst_27 = arith.constant dense<0.000000e+00> : vector<8xf32>
    %82 = vector.multi_reduction <add>, %81, %cst_27 [1] : vector<8x128xf32> to vector<8xf32>
    %83 = vector.shape_cast %82 : vector<8xf32> to vector<8x1xf32>
    %cst_28 = arith.constant 1.280000e+02 : f32
    %84 = vector.broadcast %cst_28 : f32 to vector<8x1xf32>
    %85 = arith.divf %83, %84 : vector<8x1xf32>
    %cst_29 = arith.constant 9.99999974E-6 : f32
    %86 = vector.broadcast %cst_29 : f32 to vector<8x1xf32>
    %87 = arith.addf %85, %86 : vector<8x1xf32>
    %88 = math.rsqrt %87 : vector<8x1xf32>
    %89 = vector.broadcast %88 : vector<8x1xf32> to vector<8x128xf32>
    %90 = arith.mulf %80, %89 : vector<8x128xf32>
    %91 = vector.broadcast %73 : vector<1x128xf32> to vector<8x128xf32>
    %92 = arith.mulf %90, %91 : vector<8x128xf32>
    %93 = vector.broadcast %74 : vector<1x128xf32> to vector<8x128xf32>
    %94 = arith.addf %92, %93 : vector<8x128xf32>
    %95 = arith.truncf %94 : vector<8x128xf32> to vector<8x128xbf16>
    %c0_30 = arith.constant 0 : index
    %c0_31 = arith.constant 0 : index
    %c0_32 = arith.constant 0 : index
    %96 = vector.load %arg6[%c0_30, %c0_31, %c0_32] : memref<1x128x512xbf16, #tpu.memory_space<vmem>>, vector<1x128x512xbf16>
    %97 = vector.shape_cast %96 : vector<1x128x512xbf16> to vector<128x512xbf16>
    %cst_33 = arith.constant dense<0.000000e+00> : vector<8x512xf32>
    %98 = tpu.matmul %95, %97, %cst_33 {dimension_numbers = #tpu.dot_dimension_numbers<[1], [0], [0], [1], [0, 0, 1, 1], [], []>} : vector<8x128xbf16>, vector<128x512xbf16>, vector<8x512xf32> -> vector<8x512xf32>
    %c0_34 = arith.constant 0 : index
    %c0_35 = arith.constant 0 : index
    %c0_36 = arith.constant 0 : index
    %99 = vector.load %arg7[%c0_34, %c0_35, %c0_36] : memref<1x1x512xf32, #tpu.memory_space<vmem>>, vector<1x1x512xf32>
    %100 = vector.shape_cast %99 : vector<1x1x512xf32> to vector<1x512xf32>
    %101 = vector.broadcast %100 : vector<1x512xf32> to vector<8x512xf32>
    %102 = arith.addf %98, %101 : vector<8x512xf32>
    %103 = arith.mulf %102, %102 : vector<8x512xf32>
    %104 = arith.mulf %102, %103 : vector<8x512xf32>
    %cst_37 = arith.constant 4.471500e-02 : f32
    %105 = vector.broadcast %cst_37 : f32 to vector<8x512xf32>
    %106 = arith.mulf %105, %104 : vector<8x512xf32>
    %107 = arith.addf %102, %106 : vector<8x512xf32>
    %cst_38 = arith.constant 0.797884583 : f32
    %108 = vector.broadcast %cst_38 : f32 to vector<8x512xf32>
    %109 = arith.mulf %108, %107 : vector<8x512xf32>
    %110 = math.tanh %109 : vector<8x512xf32>
    %cst_39 = arith.constant 1.000000e+00 : f32
    %111 = vector.broadcast %cst_39 : f32 to vector<8x512xf32>
    %112 = arith.addf %111, %110 : vector<8x512xf32>
    %cst_40 = arith.constant 5.000000e-01 : f32
    %113 = vector.broadcast %cst_40 : f32 to vector<8x512xf32>
    %114 = arith.mulf %113, %112 : vector<8x512xf32>
    %115 = arith.mulf %102, %114 : vector<8x512xf32>
    %116 = arith.truncf %115 : vector<8x512xf32> to vector<8x512xbf16>
    %c0_41 = arith.constant 0 : index
    %c0_42 = arith.constant 0 : index
    %c0_43 = arith.constant 0 : index
    %117 = vector.load %arg8[%c0_41, %c0_42, %c0_43] : memref<1x512x128xbf16, #tpu.memory_space<vmem>>, vector<1x512x128xbf16>
    %118 = vector.shape_cast %117 : vector<1x512x128xbf16> to vector<512x128xbf16>
    %cst_44 = arith.constant dense<0.000000e+00> : vector<8x128xf32>
    %119 = tpu.matmul %116, %118, %cst_44 {dimension_numbers = #tpu.dot_dimension_numbers<[1], [0], [0], [1], [0, 0, 1, 1], [], []>} : vector<8x512xbf16>, vector<512x128xbf16>, vector<8x128xf32> -> vector<8x128xf32>
    %120 = vector.extract_strided_slice %5 {offsets = [1, 0], sizes = [1, 128], strides = [1, 1]} : vector<8x128xf32> to vector<1x128xf32>
    %121 = vector.broadcast %120 : vector<1x128xf32> to vector<8x128xf32>
    %122 = arith.addf %119, %121 : vector<8x128xf32>
    %123 = arith.addf %72, %122 : vector<8x128xf32>
    %c0_45 = arith.constant 0 : index
    %c0_46 = arith.constant 0 : index
    %124 = vector.load %arg12[%c0_45, %c0_46] : memref<8x128xf32, #tpu.memory_space<vmem>>, vector<8x128xf32>
    tpu.vector_store %arg12[%c0_45, %c0_46], %123 {strides = array<i32>} : memref<8x128xf32, #tpu.memory_space<vmem>>, vector<8x128xf32>,
    %c1_i32 = arith.constant 1 : i32
    %125 = arith.cmpi eq, %arg1, %c1_i32 : i32
    %126 = arith.extui %125 : i1 to i32
    %c0_i32_47 = arith.constant 0 : i32
    %127 = arith.cmpi ne, %126, %c0_i32_47 : i32
    scf.if %127 {
      %128 = vector.extract_strided_slice %5 {offsets = [6, 0], sizes = [1, 128], strides = [1, 1]} : vector<8x128xf32> to vector<1x128xf32>
      %129 = vector.extract_strided_slice %5 {offsets = [7, 0], sizes = [1, 128], strides = [1, 1]} : vector<8x128xf32> to vector<1x128xf32>
      %cst_48 = arith.constant dense<0.000000e+00> : vector<8xf32>
      %130 = vector.multi_reduction <add>, %123, %cst_48 [1] : vector<8x128xf32> to vector<8xf32>
      %131 = vector.shape_cast %130 : vector<8xf32> to vector<8x1xf32>
      %cst_49 = arith.constant 1.280000e+02 : f32
      %132 = vector.broadcast %cst_49 : f32 to vector<8x1xf32>
      %133 = arith.divf %131, %132 : vector<8x1xf32>
      %134 = vector.broadcast %133 : vector<8x1xf32> to vector<8x128xf32>
      %135 = arith.subf %123, %134 : vector<8x128xf32>
      %136 = arith.mulf %135, %135 : vector<8x128xf32>
      %cst_50 = arith.constant dense<0.000000e+00> : vector<8xf32>
      %137 = vector.multi_reduction <add>, %136, %cst_50 [1] : vector<8x128xf32> to vector<8xf32>
      %138 = vector.shape_cast %137 : vector<8xf32> to vector<8x1xf32>
      %cst_51 = arith.constant 1.280000e+02 : f32
      %139 = vector.broadcast %cst_51 : f32 to vector<8x1xf32>
      %140 = arith.divf %138, %139 : vector<8x1xf32>
      %cst_52 = arith.constant 9.99999974E-6 : f32
      %141 = vector.broadcast %cst_52 : f32 to vector<8x1xf32>
      %142 = arith.addf %140, %141 : vector<8x1xf32>
      %143 = math.rsqrt %142 : vector<8x1xf32>
      %144 = vector.broadcast %143 : vector<8x1xf32> to vector<8x128xf32>
      %145 = arith.mulf %135, %144 : vector<8x128xf32>
      %146 = vector.broadcast %128 : vector<1x128xf32> to vector<8x128xf32>
      %147 = arith.mulf %145, %146 : vector<8x128xf32>
      %148 = vector.broadcast %129 : vector<1x128xf32> to vector<8x128xf32>
      %149 = arith.addf %147, %148 : vector<8x128xf32>
      %150 = vector.shape_cast %149 : vector<8x128xf32> to vector<1x8x128xf32>
      %c0_53 = arith.constant 0 : index
      %c0_54 = arith.constant 0 : index
      %c0_55 = arith.constant 0 : index
      %151 = vector.load %arg10[%c0_53, %c0_54, %c0_55] : memref<1x8x128xf32, #tpu.memory_space<vmem>>, vector<1x8x128xf32>
      tpu.vector_store %arg10[%c0_53, %c0_54, %c0_55], %150 {strides = array<i32>} : memref<1x8x128xf32, #tpu.memory_space<vmem>>, vector<1x8x128xf32>,
      %cst_56 = arith.constant dense<0.000000e+00> : vector<128xf32>
      %152 = vector.multi_reduction <add>, %149, %cst_56 [0] : vector<8x128xf32> to vector<128xf32>
      %cst_57 = arith.constant 8.000000e+00 : f32
      %153 = vector.broadcast %cst_57 : f32 to vector<128xf32>
      %154 = arith.divf %152, %153 : vector<128xf32>
      %155 = vector.shape_cast %154 : vector<128xf32> to vector<1x1x128xf32>
      %c0_58 = arith.constant 0 : index
      %c0_59 = arith.constant 0 : index
      %c0_60 = arith.constant 0 : index
      %156 = vector.load %arg11[%c0_58, %c0_59, %c0_60] : memref<1x1x128xf32, #tpu.memory_space<vmem>>, vector<1x1x128xf32>
      tpu.vector_store %arg11[%c0_58, %c0_59, %c0_60], %155 {strides = array<i32>} : memref<1x1x128xf32, #tpu.memory_space<vmem>>, vector<1x1x128xf32>,
    } else {
    }
    return
  }
  func.func @transform_1(%arg0: i32, %arg1: i32) -> (i32, i32, i32) {
    %c0_i32 = arith.constant 0 : i32
    %c0_i32_0 = arith.constant 0 : i32
    %c0_i32_1 = arith.constant 0 : i32
    return %arg1, %c0_i32, %c0_i32_0 : i32, i32, i32
  }
  func.func @transform_2(%arg0: i32, %arg1: i32) -> (i32, i32, i32) {
    %c0_i32 = arith.constant 0 : i32
    %c0_i32_0 = arith.constant 0 : i32
    %c0_i32_1 = arith.constant 0 : i32
    return %arg1, %c0_i32, %c0_i32_0 : i32, i32, i32
  }
  func.func @transform_3(%arg0: i32, %arg1: i32) -> (i32, i32, i32) {
    %c0_i32 = arith.constant 0 : i32
    %c0_i32_0 = arith.constant 0 : i32
    %c0_i32_1 = arith.constant 0 : i32
    return %arg1, %c0_i32, %c0_i32_0 : i32, i32, i32
  }
  func.func @transform_4(%arg0: i32, %arg1: i32) -> (i32, i32, i32) {
    %c0_i32 = arith.constant 0 : i32
    %c0_i32_0 = arith.constant 0 : i32
    %c0_i32_1 = arith.constant 0 : i32
    return %arg1, %c0_i32, %c0_i32_0 : i32, i32, i32
  }
  func.func @transform_5(%arg0: i32, %arg1: i32) -> (i32, i32, i32) {
    %c0_i32 = arith.constant 0 : i32
    %c0_i32_0 = arith.constant 0 : i32
    %c0_i32_1 = arith.constant 0 : i32
    return %arg1, %c0_i32, %c0_i32_0 : i32, i32, i32
  }
  func.func @transform_6(%arg0: i32, %arg1: i32) -> (i32, i32, i32) {
    %c0_i32 = arith.constant 0 : i32
    %c0_i32_0 = arith.constant 0 : i32
    %c0_i32_1 = arith.constant 0 : i32
    return %arg1, %c0_i32, %c0_i32_0 : i32, i32, i32
  }
  func.func @transform_7(%arg0: i32, %arg1: i32) -> (i32, i32, i32) {
    %c0_i32 = arith.constant 0 : i32
    %c0_i32_0 = arith.constant 0 : i32
    %c0_i32_1 = arith.constant 0 : i32
    return %arg1, %c0_i32, %c0_i32_0 : i32, i32, i32
  }
  func.func @transform_8(%arg0: i32, %arg1: i32) -> (i32, i32, i32) {
    %c0_i32 = arith.constant 0 : i32
    %c0_i32_0 = arith.constant 0 : i32
    %c0_i32_1 = arith.constant 0 : i32
    return %arg0, %c0_i32, %c0_i32_0 : i32, i32, i32
  }
  func.func @transform_9(%arg0: i32, %arg1: i32) -> (i32, i32, i32) {
    %c0_i32 = arith.constant 0 : i32
    %c0_i32_0 = arith.constant 0 : i32
    %c0_i32_1 = arith.constant 0 : i32
    return %arg0, %c0_i32, %c0_i32_0 : i32, i32, i32
  }
}

</mosaic_0001>

<bundles_post_ra>
// kernel: sequence_view_forward.1
= control target key start
LH: loop header
LB: loop body
LE: loop exit
PB: predicated region body
PF: predicated region fallthrough
CT: control target
= control target key end

     0   :  { %s4181_s0 = inlined_call_operand.vmem [shape: f32[2,8,128], index: 0, kind: input, shape index: {}]   ;;  %s4182_s1 = inlined_call_operand.hbm [shape: bf16[2,128,384], index: 1, kind: input, shape index: {}]   ;;  %s4183_s2 = inlined_call_operand.vmem [shape: f32[2,1,384], index: 2, kind: input, shape index: {}]   ;;  %s4184_s3 = inlined_call_operand.vmem [shape: bf16[2,128,128], index: 3, kind: input, shape index: {}]   ;;  %s4185_s4 = inlined_call_operand.hbm [shape: bf16[2,128,512], index: 4, kind: input, shape index: {}]   ;;  %s4186_s5 = inlined_call_operand.vmem [shape: f32[2,1,512], index: 5, kind: input, shape index: {}]   ;;  %s4187_s6 = inlined_call_operand.hbm [shape: bf16[2,512,128], index: 6, kind: input, shape index: {}]   ;;  %s4188_s7 = inlined_call_operand.vmem [shape: f32[2,8,128], index: 7, kind: input, shape index: {}]   ;;  %s4189_s8 = inlined_call_operand.hbm [shape: f32[2,8,128], index: 8, kind: output, shape index: {0}]   ;;  %s4190_s9 = inlined_call_operand.hbm [shape: f32[2,1,128], index: 9, kind: output, shape index: {1}]  }
   0x1   :  { %4204 = sst [smem:[#allocation30_spill]] %s4181_s0 }
   0x2   :  { %4205 = sst [smem:[#allocation31_spill]] %s4182_s1 }
   0x3   :  { %4206 = sst [smem:[#allocation32_spill]] %s4185_s4 }
   0x4   :  { %4207 = sst [smem:[#allocation33_spill]] %s4187_s6 }
   0x5   :  { %4208 = sst [smem:[#allocation34_spill]] %s4189_s8 }
   0x6   :  { %4209 = sst [smem:[#allocation35_spill]] %s4190_s9 }
   0x7   :  { %15 = vsyncpa [#allocation5], 0 }
   0x8   :  { %17 = vsyncpa [#allocation5 + $0x1], 0 }
   0x9   :  { %18 = vsyncpa [#allocation8], 0 }
   0xa   :  { %20 = vsyncpa [#allocation8 + $0x1], 0 }
   0xb   :  { %21 = vsyncpa [#allocation6], 0 }
   0xc   :  { %23 = vsyncpa [#allocation6 + $0x1], 0 }
   0xd   :  { %24 = vsyncpa [#allocation12], 0 }
   0xe   :  { %26 = vsyncpa [#allocation12 + $0x1], 0  ;;  %s3496_s30 = smov 0   ;;  %s3498_s10 = smov 0  }
   0xf   :  { %s3500_s11 = smov 0   ;;  %s3502_s12 = smov 0  }
  0x10   :  { %s3504_s13 = smov 0   ;;  %s3506_s14 = smov 0  }
  0x11   :  { %s3508_s15 = smov 0   ;;  %s3510_s16 = smov 0  }
  0x12   :  { %s3512_s17 = smov 0   ;;  %s3514_s18 = smov 0  }
  0x13   :  { %s3516_s19 = smov 0  }
  0x14 LB: > { %4210 = sst [smem:[#allocation19_spill]] %s3391_s30  ;;  %s3550_s20 = sadd.s32 4294967295, %s3431_s19   ;;  %s3431_s19 = sphi %s3516_s19, %s32_s19   ;;  %s3427_s18 = sphi %s3514_s18, %s4244_s18   ;;  %s3423_s17 = sphi %s3512_s17, %s4250_s17   ;;  %s3419_s16 = sphi %s3510_s16, %s4242_s16   ;;  %s3415_s15 = sphi %s3508_s15, %s4249_s15   ;;  %s3411_s14 = sphi %s3506_s14, %s4241_s14   ;;  %s3407_s13 = sphi %s3504_s13, %s4248_s13   ;;  %s3403_s12 = sphi %s3502_s12, %s4247_s12   ;;  %s3399_s11 = sphi %s3500_s11, %s4239_s11   ;;  %s3395_s10 = sphi %s3498_s10, %s4246_s10   ;;  %s3391_s30 = sphi %s3496_s30, %s4245_s30  }
  0x15   : > { %4211 = sst [smem:[#allocation20_spill]] %s3399_s11  ;;  %s2494_s21 = sadd.s32 4294967294, %s3431_s19  }
  0x16   : > { %4212 = sst [smem:[#allocation21_spill]] %s3411_s14  ;;  %s41_s22 = sadd.s32 1, %s3423_s17 }
  0x17   : > { %4213 = sst [smem:[#allocation22_spill]] %s3427_s18  ;;  %s44_s23 = sadd.s32 1, %s3427_s18 }
  0x18   : > { %4214 = sst [smem:[#allocation23_spill]] %s3431_s19  ;;  %p42_p0 = scmp.ge.s32.totalorder %s41_s22, 2 }
  0x19   : > { %s51_s24 = sadd.s32 1, %s3411_s14  ;;  %p58_p1 = scmp.ne.s32.totalorder %s3411_s14, %s3407_s13 }
  0x1a   : > { %p59_p2 = scmp.eq.s32.totalorder %s3431_s19, 0  ;;  %s4252_s22 = smov (%p42_p0, %s41_s22), 0 }
  0x1b   : > { %4215 = sst [smem:[#allocation24_spill]] %s4252_s22  ;;  %s4254_s23 = smov (!%p42_p0, %s44_s23), %s3427_s18 }
  0x1c   : > { %s48_s25 = ssub.s32 %s3423_s17, %s4252_s22  ;;  %p3564_p3 = por %p59_p2, %p58_p1 }
  0x1d   : > { %p46_p4 = scmp.ge.s32.totalorder %s4254_s23, 2  ;;  %p49_p5 = scmp.eq.s32.totalorder %s48_s25, 0 }
  0x1e   : > { %p64_p6 = scmp.ne.s32.totalorder %s3407_s13, %s3403_s12  ;;  %p65_p7 = scmp.eq.s32.totalorder %s3550_s20, 0 }
  0x1f   : > { %s4256_s23 = smov (%p46_p4, %s4254_s23), 0  ;;  %s233_s22 = sadd.s32 1, %s3399_s11 }
  0x20   : > { %4217 = sst [smem:[#allocation25_spill]] %s4256_s23  ;;  %p3575_p8 = por %p65_p7, %p64_p6 }
  0x21   : > { %s3573_s27 = scalar_select %p49_p5, %s3411_s14, %s51_s24  }
  0x22   : > { %s230_s29 = ssub.s32 %s3427_s18, %s4256_s23  ;;  %p243_p10 = scmp.ne.s32.totalorder %s3399_s11, %s3395_s10 }
  0x23   : > { %4218 = sst [smem:[#allocation26_spill]] %s3573_s27  ;;  %p231_p9 = scmp.eq.s32.totalorder %s230_s29, 0 }
  0x24   : > { %p244_p11 = scmp.eq.s32.totalorder %s3550_s20, 3  ;;  %p249_p13 = scmp.ne.s32.totalorder %s3395_s10, %s3391_s30 }
  0x25   : > { %s3586_s25 = scalar_select %p231_p9, %s3399_s11, %s233_s22  }
  0x26   : > { %p3588_p12 = por %p244_p11, %p243_p10  ;;  %p250_p0 = scmp.eq.s32.totalorder %s2494_s21, 3 }
  0x27   : > { %4220 = sst [smem:[#allocation27_spill]] %s3586_s25  ;;  %p3042_p1 = scmp.lt.s32.totalorder %s3431_s19, 4 }
  0x28   : > { %s4221_s12 = scalar_select %p3588_p12, 1, 0 }
  0x29   : > { %s3596_s24 = sand.u32 1, %s3411_s14   ;;  %p3598_p2 = por %p250_p0, %p249_p13 }
  0x2a   : > { %4222 = sst [smem:[#allocation28_spill]] %s4221_s12  ;;  %s333_s29 = sand.u32 1, %s3431_s19  }
  0x2b   : > { %s4223_s27 = scalar_select %p3598_p2, 1, 0 }
  0x2c   : > { %p3605_p4 = pnand %p3042_p1, %p3564_p3  ;;  %s2498_s22 = sshll.u32 %s3596_s24, 8 }
  0x2d   : > { %4224 = sst [smem:[#allocation29_spill]] %s4223_s27  ;;  %s2912_s18 = sshll.u32 %s3423_s17, 8 }
  0x2e   : > { %s4226_s4 = sld [smem:[#allocation32_spill]]  ;;  %s337_s14 = scalar_lea.vmem [#allocation7], %s2498_s22 }
  0x2f   : > { %s345_s30 = sshll.u32 %s337_s14, 4  ;;  %s3614_s26 = scalar_lea.sflag [#allocation8], %s333_s29  ;;  %s346_s30 = int_to_ptr.vmem [resolvable:$true] %s345_s30 }
  0x30   : > { %s3433_s27 = smov 256   ;;  %s3434_s8 = smov 16  }
  0x31   : > { %s4227_s6 = sld [smem:[#allocation33_spill]]  ;;  %s366_s25 = scalar_lea.vmem [#allocation9], %s2498_s22 }
  0x32   : > { %p2504_p3 = scmp.ge.s32.totalorder %s3431_s19, 1  ;;  %p389_p5 = scmp.lt.s32.totalorder %s3431_s19, 5 }
  0x33   : > { %s4229_s1 = sld [smem:[#allocation31_spill]]  ;;  %s3438_s19 = smov 4  }
  0x34   : > { %s342_s21 = scalar_lea.hbm %s4226_s4, %s2912_s18  ;;  %s374_s4 = sshll.u32 %s366_s25, 4  ;;  %s375_s4 = int_to_ptr.vmem [resolvable:$true] %s374_s4 }
  0x35   : > { %s343_s9 = sshll.u32 %s342_s21, 4  ;;  %p3624_p6 = pnand %p2504_p3, %p389_p5  ;;  %s344_s9 = int_to_ptr.hbm [resolvable:$true] %s343_s9 }
  0x36   : > { %3031 = dma.hbm_to_vmem [thread:$0]  (!%p3605_p4), %s344_s9, 4096, %s346_s30, %s3614_s26, %s3433_s27, %s3433_s27, %s3434_s8  }
  0x37   : > { %s371_s11 = scalar_lea.hbm %s4227_s6, %s2912_s18  ;;  %s3011_s8 = smul.u32 192, %s3596_s24 }
  0x38   : > { %s372_s14 = sshll.u32 %s371_s11, 4  ;;  %s3012_s9 = smul.u32 192, %s3423_s17  ;;  %s373_s14 = int_to_ptr.hbm [resolvable:$true] %s372_s14 }
  0x39   : > { %s300_s27 = scalar_lea.vmem [#allocation4], %s3011_s8  ;;  %s297_s21 = scalar_lea.sflag [#allocation5], %s3596_s24 }
  0x3a   : > { %s305_s18 = scalar_lea.hbm %s4229_s1, %s3012_s9  ;;  %s308_s12 = sshll.u32 %s300_s27, 4  ;;  %s309_s12 = int_to_ptr.vmem [resolvable:$true] %s308_s12 }
  0x3b   : > { %s306_s22 = sshll.u32 %s305_s18, 4  ;;  %s3435_s11 = smov 192   ;;  %s307_s22 = int_to_ptr.hbm [resolvable:$true] %s306_s22 }
  0x3c   : > { %s3436_s25 = smov 12   ;;  %s3437_s6 = smov 64  }
  0x3d   : > { %3028 = dma.hbm_to_vmem [thread:$0]  (!%p3605_p4), %s307_s22, 3072, %s309_s12, %s297_s21, %s3435_s11, %s3435_s11, %s3436_s25  }
  0x3e   : > { %3034 = dma.hbm_to_vmem [thread:$0]  (!%p3605_p4), %s373_s14, 4096, %s375_s4, %s3614_s26, %s3437_s6, %s3437_s6, %s3438_s19  }
  0x3f   : > { %393 = sbr.rel (%p3624_p6) target bundleno = 2374 (0x946), region = 48  ;;  %s395_s9 = sand.u32 (!%p3624_p6), 1, %s3407_s13  }
  0x40   : > { %s3013_s8 = smul.u32 (!%p3624_p6), 192, %s395_s9  ;;  %s396_s30 = scalar_lea.sflag (!%p3624_p6), [#allocation5], %s395_s9 }
  0x42   : > { %s3642_s0 = scalar_lea.vmem (!%p3624_p6), [#allocation4], %s3013_s8 }
  0x44   : > { %3372 = dma.done.wait (%p3575_p8), %s396_s30, 3072  }
  0x45   : > { %3374 = vsyncadd (%p3575_p8), %s396_s30, 4294964224  ;;  %s405_s24 = sand.u32 1, %s3550_s20   ;;  %s2505_s23 = sshll.u32 %s395_s9, 8 }
  0x46   : > { %s406_s4 = scalar_lea.sflag [#allocation8], %s405_s24  ;;  %s3649_s6 = scalar_lea.vmem [#allocation7], %s2505_s23 }
  0x47   : > { %3376 = dma.done.wait (%p3575_p8), %s406_s4, 8192  }
  0x48   : > { %3378 = vsyncadd (%p3575_p8), %s406_s4, 4294959104  ;;  %s3656_s19 = sand.u32 1, %s3395_s10   ;;  %p484_p7 = scmp.lt.s32.totalorder %s3415_s15, 1 }
  0x49   : > { %s2507_s26 = sshll.u32 %s3656_s19, 3  ;;  %s3681_s18 = scalar_lea.vmem [#allocation9], %s2505_s23 }
  0x4a   : > { %s485_s14 = scalar_select %p484_p7, %s3415_s15, 1 }
  0x4b   : > { %s483_s27 = scalar_lea.vmem [#allocation11], %s3656_s19  ;;  %p2512_p8 = scmp.ne.s32.totalorder %s3415_s15, 0 }
  0x4c   : > { %s3014_s20 = smul.u32 3, %s485_s14  ;;  %s2914_s29 = sshll.u32 %s485_s14, 6 }
  0x4d   : > { %s3664_s12 = scalar_lea.vmem %s4184_s3, %s2914_s29  ;;  %s2510_s22 = sshll.u32 %s485_s14, 2 }
  0x4e   : > { %s3669_s11 = scalar_lea.vmem %s4183_s2, %s3014_s20  ;;  %s3674_s8 = scalar_lea.vmem %s4186_s5, %s2510_s22 }
  0x4f   : > { %s2511_s30 = sshll.u32 %s485_s14, 3  ;;  %s3683_s29 = scalar_lea.vmem [#allocation10], %s2507_s26 }
  0x50   : > { %s3679_s1 = scalar_lea.vmem %s4188_s7, %s2511_s30  ;;  %505 = sbr.rel (%p2512_p8) target bundleno = 93 (0x5d), region = 64 }
  0x51   : > { %s2513_s20 = sshll.u32 (!%p2512_p8), %s3419_s16, 3  ;;  %s4230_s22 = sld [smem:[#allocation30_spill]] (!%p2512_p8) }
  0x57   : > { %s507_s25 = scalar_lea.vmem %s4230_s22, %s2513_s20 }
  0x58   : > { %v534_v0 = vld [vmem:[%s507_s25] sm:$0xff] }
  0x59   : > { %535 = vst [vmem:[#allocation2] sm:$0xff] %v534_v0 }
  0x5a   : > { %541 = vsyncadd [#allocation3], 128 }
  0x5b   : > { %3379 = dma.done.wait [#allocation3], 128 }
  0x5c   : > { %3380 = vsyncadd [#allocation3], 4294967168 }
  0x5d PF: > { %v3439_v2 = vmov 128.0   ;;  %v2600_v3 = vld [vmem:[%s3642_s0 + $0xa8] sm:$0xf]  ;;  %v2937_v4 = vld [vmem:[%s3642_s0 + $0xb0] sm:$0xf0]  ;;  %s3441_s23 = smov 96  }
  0x5e   : > { %3145 = vrcp.f32 %v3439_v2  ;;  %v2936_v5 = vld [vmem:[%s3642_s0 + $0xac] sm:$0xf]  ;;  %v2601_v6 = vor.u32 %v2937_v4, %v2600_v3  ;;  %v2602_v7 = vld [vmem:[%s3642_s0 + $0xb4] sm:$0xf0]  ;;  %v2608_v8 = vld [vmem:[%s3642_s0 + $0xb0] sm:$0xf] }
  0x5f   : > { %v2938_v9 = vld [vmem:[%s3642_s0 + $0xb8] sm:$0xf0]  ;;  %v2605_v10 = vor.u32 %v2936_v5, %v2602_v7  ;;  %v2588_v22 = vld [vmem:[%s3642_s0 + $0x90] sm:$0xf]  ;;  %v2933_v24 = vld [vmem:[%s3642_s0 + $0x94] sm:$0xf] }
  0x60   : > { %v545_v1 = vld [vmem:[#allocation2] sm:$0xff]  ;;  %v2609_v11 = vor.u32 %v2938_v9, %v2608_v8  ;;  %747 = vmatpush.bf16.msra.mxu0 %v2601_v6  ;;  %v2590_v26 = vld [vmem:[%s3642_s0 + $0x9c] sm:$0xf0]  ;;  %v2935_v28 = vld [vmem:[%s3642_s0 + $0xa0] sm:$0xf0]  ;;  %s3442_s26 = smov 64  }
  0x61   : > { %547 = vadd.xlane.f32.xlu0 %v545_v1  ;;  %760 = vmatpush.bf16.msra.mxu1 %v2605_v10  ;;  %v2934_v23 = vld [vmem:[%s3642_s0 + $0x98] sm:$0xf0]  ;;  %v2596_v27 = vld [vmem:[%s3642_s0 + $0x98] sm:$0xf]  ;;  %v2593_v29 = vor.u32 %v2933_v24, %v2590_v26  ;;  %v2931_v32 = vld [vmem:[%s3642_s0 + $0x80] sm:$0xf0] }
  0x62   : > { %773 = vmatpush.bf16.msra.mxu2 %v2609_v11  ;;  %v2589_v25 = vor.u32 %v2934_v23, %v2588_v22  ;;  %v2597_v30 = vor.u32 %v2935_v28, %v2596_v27  ;;  %v2576_v31 = vld [vmem:[%s3642_s0 + $0x78] sm:$0xf]  ;;  %v2930_v33 = vld [vmem:[%s3642_s0 + $0x7c] sm:$0xf]  ;;  %v2578_v35 = vld [vmem:[%s3642_s0 + $0x84] sm:$0xf0] }
  0x63   : > { %v2577_v34 = vor.u32 %v2931_v32, %v2576_v31  ;;  %v2584_v36 = vld [vmem:[%s3642_s0 + $0x80] sm:$0xf]  ;;  %v2932_v37 = vld [vmem:[%s3642_s0 + $0x88] sm:$0xf0]  ;;  %v2581_v38 = vor.u32 %v2930_v33, %v2578_v35  ;;  %v2927_v42 = vld [vmem:[%s3642_s0 + $0x64] sm:$0xf] }
  0x64   : > { %v3146_v12 = vpop.eup %3145  ;;  %748 = vmatpush.bf16.msra.mxu0 %v2589_v25  ;;  %v2585_v39 = vor.u32 %v2932_v37, %v2584_v36  ;;  %v2564_v40 = vld [vmem:[%s3642_s0 + $0x60] sm:$0xf]  ;;  %v2928_v41 = vld [vmem:[%s3642_s0 + $0x68] sm:$0xf0]  ;;  %v2566_v44 = vld [vmem:[%s3642_s0 + $0x6c] sm:$0xf0] }
  0x65   : > { %v550_v13 = vmul.f32 128.0, %v3146_v12  ;;  %vm554_vm0 = vweird.f32 %v3146_v12  ;;  %761 = vmatpush.bf16.msra.mxu1 %v2593_v29  ;;  %v2565_v43 = vor.u32 %v2928_v41, %v2564_v40  ;;  %v2572_v45 = vld [vmem:[%s3642_s0 + $0x68] sm:$0xf]  ;;  %v2929_v46 = vld [vmem:[%s3642_s0 + $0x70] sm:$0xf0]  ;;  %v2569_v47 = vor.u32 %v2927_v42, %v2566_v44  ;;  %p2906_p9 = scmp.ne.s32.totalorder %s3415_s15, 1 }
  0x66   : > { %774 = vmatpush.bf16.msra.mxu2 %v2597_v30  ;;  %v2573_v48 = vor.u32 %v2929_v46, %v2572_v45  ;;  %v2552_v49 = vld [vmem:[%s3642_s0 + $0x48] sm:$0xf]  ;;  %v2925_v50 = vld [vmem:[%s3642_s0 + $0x50] sm:$0xf0]  ;;  %v2924_v51 = vld [vmem:[%s3642_s0 + $0x4c] sm:$0xf] }
  0x67   : > { %v551_v14 = vsub.f32 1.0, %v550_v13  ;;  %v2553_v52 = vor.u32 %v2925_v50, %v2552_v49  ;;  %v2554_v53 = vld [vmem:[%s3642_s0 + $0x54] sm:$0xf0]  ;;  %v2560_v54 = vld [vmem:[%s3642_s0 + $0x50] sm:$0xf]  ;;  %vm797_vm4 = vcmask 1047556  }
  0x68   : > { %749 = vmatpush.bf16.msra.mxu0 %v2577_v34  ;;  %v2926_v55 = vld [vmem:[%s3642_s0 + $0x58] sm:$0xf0]  ;;  %v2557_v56 = vor.u32 %v2924_v51, %v2554_v53  ;;  %v2540_v58 = vld [vmem:[%s3642_s0 + $0x30] sm:$0xf]  ;;  %v2921_v60 = vld [vmem:[%s3642_s0 + $0x34] sm:$0xf] }
  0x69   : > { %v552_v15 = vmul.f32 %v3146_v12, %v551_v14  ;;  %762 = vmatpush.bf16.msra.mxu1 %v2581_v38  ;;  %v2561_v57 = vor.u32 %v2926_v55, %v2560_v54  ;;  %v2922_v59 = vld [vmem:[%s3642_s0 + $0x38] sm:$0xf0]  ;;  %v2542_v62 = vld [vmem:[%s3642_s0 + $0x3c] sm:$0xf0]  ;;  %v2548_v63 = vld [vmem:[%s3642_s0 + $0x38] sm:$0xf] }
  0x6a   : > { %775 = vmatpush.bf16.msra.mxu2 %v2585_v39  ;;  %v2541_v61 = vor.u32 %v2922_v59, %v2540_v58  ;;  %v2923_v0 = vld [vmem:[%s3642_s0 + $0x40] sm:$0xf0]  ;;  %v2528_v3 = vld [vmem:[%s3642_s0 + $0x18] sm:$0xf]  ;;  %v2918_v5 = vld [vmem:[%s3642_s0 + $0x1c] sm:$0xf] }
  0x6b   : > { %v553_v16 = vadd.f32 %v3146_v12, %v552_v15  ;;  %v2549_v2 = vor.u32 %v2923_v0, %v2548_v63  ;;  %v2919_v4 = vld [vmem:[%s3642_s0 + $0x20] sm:$0xf0]  ;;  %v2530_v7 = vld [vmem:[%s3642_s0 + $0x24] sm:$0xf0]  ;;  %v2536_v8 = vld [vmem:[%s3642_s0 + $0x20] sm:$0xf] }
  0x6c   : > { %750 = vmatpush.bf16.msra.mxu0 %v2565_v43  ;;  %v2529_v6 = vor.u32 %v2919_v4, %v2528_v3  ;;  %v2920_v9 = vld [vmem:[%s3642_s0 + $0x28] sm:$0xf0]  ;;  %v2533_v10 = vor.u32 %v2918_v5, %v2530_v7  ;;  %v2915_v14 = vld [vmem:[%s3642_s0 + $0x4] sm:$0xf]  ;;  %v3748_v31 = vld [vmem:[%s3679_s1] sm:$0xff]  ;;  %vm1159_vm5 = vcmask 261120  }
  0x6d   : > { %v3697_v17 = vsel %vm554_vm0, %v3146_v12, %v553_v16  ;;  %763 = vmatpush.bf16.msra.mxu1 %v2569_v47  ;;  %v2537_v11 = vor.u32 %v2920_v9, %v2536_v8  ;;  %v2516_v12 = vld [vmem:[%s3642_s0] sm:$0xf]  ;;  %v2916_v13 = vld [vmem:[%s3642_s0 + $0x8] sm:$0xf0]  ;;  %v2518_v16 = vld [vmem:[%s3642_s0 + $0xc] sm:$0xf0] }
  0x6e   : > { %776 = vmatpush.bf16.msra.mxu2 %v2573_v48  ;;  %v2517_v15 = vor.u32 %v2916_v13, %v2516_v12  ;;  %v574_v33 = vperm.slane %v3748_v31, 2  ;;  %v576_v36 = vperm.slane %v3748_v31, 3  ;;  %v3754_v40 = vld [vmem:[%s3669_s11] sm:$0x7]  ;;  %v3443_v51 = vmov 1983009808  }
  0x6f   : > { %v613_v41 = vperm.slane %v3754_v40, 0  ;;  %v614_v42 = vperm.slane %v3754_v40, 1  ;;  %vm1240_vm6 = vcmask 64512   ;;  %vm1292_vm7 = vcmask 1043456  }
  0x70   : > { %751 = vmatpush.bf16.msra.mxu0 %v2553_v52  ;;  %v802_v52 = vunpack.c.l.s4 %v3443_v51  ;;  %vm1489_vm8 = vcmask 523264   ;;  %vm1491_vm9 = vcmask 785408  }
  0x71   : > { %764 = vmatpush.bf16.msra.mxu1 %v2557_v56 }
  0x72   : > { %777 = vmatpush.bf16.msra.mxu2 %v2561_v57  ;;  %v3767_v57 = vunpack.c.0.s8 %v802_v52 }
  0x74   : > { %752 = vmatpush.bf16.msra.mxu0 %v2541_v61 }
  0x76   : > { %778 = vmatpush.bf16.msra.mxu2 %v2549_v2 }
  0x78   : > { %753 = vmatpush.bf16.msra.mxu0 %v2529_v6 }
  0x7a   : > { %779 = vmatpush.bf16.msra.mxu2 %v2537_v11 }
  0x7c   : > { %754 = vmatpush.bf16.msra.mxu0 %v2517_v15 }
  0xd4   : > { %v548_v18 = vpop.xlane.xlu0 %547 }
  0xd5   : > { %v556_v19 = vmul.f32 %v3697_v17, %v548_v18  ;;  %v2524_v18 = vld [vmem:[%s3642_s0 + $0x8] sm:$0xf] }
  0xd7   : > { %v3700_v20 = vsub.f32 %v545_v1, %v556_v19  ;;  %v2545_v1 = vor.u32 %v2921_v60, %v2542_v62  ;;  %v2917_v19 = vld [vmem:[%s3642_s0 + $0x10] sm:$0xf0]  ;;  %s3440_s0 = smov 32   ;;  %v3444_v60 = vmov 1934713408  }
  0xd8   : > { %v2525_v22 = vor.u32 %v2917_v19, %v2524_v18  ;;  %v826_v61 = vunpack.c.l.s4 %v3444_v60 }
  0xd9   : > { %v558_v21 = vmul.f32 %v3700_v20, %v3700_v20  ;;  %765 = vmatpush.bf16.msra.mxu1 %v2545_v1 }
  0xda   : > { %780 = vmatpush.bf16.msra.mxu2 %v2525_v22  ;;  %v3772_v4 = vunpack.c.0.s8 %v826_v61 }
  0xdb   : > { %559 = vadd.xlane.f32.xlu0 %v558_v21  ;;  %v2521_v21 = vor.u32 %v2915_v14, %v2518_v16 }
  0xdd   : > { %766 = vmatpush.bf16.msra.mxu1 %v2533_v10 }
  0xe1   : > { %767 = vmatpush.bf16.msra.mxu1 %v2521_v21 }
 0x14e   : > { %v560_v23 = vpop.xlane.xlu0 %559 }
 0x14f   : > { %v561_v24 = vmul.f32 %v560_v23, %v3697_v17 }
 0x151   : > { %v562_v25 = vadd.f32 1e-05, %v561_v24 }
 0x153   : > { %3147 = vrsqrt.f32 %v562_v25  ;;  %vm569_vm2 = vweird.f32 %v562_v25 }
 0x159   : > { %v3148_v26 = vpop.eup %3147 }
 0x15a   : > { %v564_v27 = vmul.f32 %v3148_v26, %v562_v25  ;;  %vm570_vm1 = vweird.f32 %v3148_v26 }
 0x15b   : > { %vm571_vm3 = vmor %vm569_vm2, %vm570_vm1 }
 0x15c   : > { %v565_v28 = vmul.f32 %v3148_v26, %v564_v27 }
 0x15e   : > { %v566_v29 = vmul.f32 0.5, %v565_v28 }
 0x160   : > { %v567_v30 = vsub.f32 1.5, %v566_v29 }
 0x162   : > { %v568_v32 = vmul.f32 %v3148_v26, %v567_v30 }
 0x164   : > { %v572_v34 = vsel %vm571_vm3, %v3148_v26, %v568_v32 }
 0x165   : > { %v573_v35 = vmul.f32 %v572_v34, %v3700_v20 }
 0x167   : > { %v575_v37 = vmul.f32 %v574_v33, %v573_v35 }
 0x169   : > { %v577_v38 = vadd.f32 %v576_v36, %v575_v37 }
 0x16b   : > { %v578_v39 = vpack.c.bf16 %v577_v38, %v577_v38 }
 0x16d   : > { %755 = vmatmul.bf16.vlgmr.msra.gmra.mxu0 %v578_v39  ;;  %768 = vmatmul.bf16.vlgmr.msra.gmra.mxu1 %v578_v39 }
 0x16e   : > { %781 = vmatmul.bf16.vlgmr.msra.gmra.mxu2 %v578_v39 }
 0x1ea   : > { %v756_v43 = vpop.f32.mrf.mxu0  ;;  %v769_v44 = vpop.f32.mrf.mxu1 }
 0x1eb   : > { %v757_v45 = vadd.f32 %v756_v43, %v613_v41  ;;  %v770_v46 = vadd.f32 %v769_v44, %v614_v42 }
 0x1ed   : > { %918 = vrot.lane.b32.xlu2 %v770_v46, %s3440_s0  ;;  %912 = vrot.lane.b32.xlu1 %v770_v46, %s3441_s23  ;;  %v923_v0 = vrot.slane %v770_v46, 4  ;;  %v799_v2 = vrot.slane %v757_v45, 4 }
 0x1ee   : > { %790 = vrot.lane.b32.xlu0 %v757_v45, %s3442_s26 }
 0x1f1   : > { %v3761_v20 = vpop.f32.mrf.mxu2 }
 0x1f2   : > { %v758_v47 = vpop.f32.mrf.mxu0  ;;  %v771_v48 = vpop.f32.mrf.mxu1 }
 0x1f5   : > { %915 = vrot.lane.b32.xlu1 %v770_v46, %s3442_s26  ;;  %787 = vrot.lane.b32.xlu2 %v757_v45, %s3441_s23 }
 0x1f9   : > { %v784_v49 = vpop.f32.mrf.mxu2 }
 0x1fd   : > { %793 = vrot.lane.b32.xlu1 %v757_v45, %s3440_s0 }
 0x247   : > { %v919_v50 = vpop.permute.xlu2 %918 }
 0x248   : > { %v933_v55 = vrot.slane %v919_v50, 4 }
 0x24f   : > { %v788_v16 = vpop.permute.xlu2 %787 }
 0x250   : > { %v811_v28 = vrot.slane %v788_v16, 4 }
 0x25f   : > { %v913_v53 = vpop.permute.xlu1 %912 }
 0x260   : > { %v935_v54 = vrot.slane %v913_v53, 4  ;;  %v791_v58 = vpop.permute.xlu0 %790  ;;  %v934_v59 = vsel %vm797_vm4, %v933_v55, %v913_v53 }
 0x261   : > { %v796_v63 = vrot.slane %v791_v58, 4  ;;  %v940_v1 = vperm.slane %v934_v59, %v3767_v57  ;;  %v800_v8 = vsel %vm797_vm4, %v791_v58, %v799_v2 }
 0x262   : > { %v936_v56 = vsel %vm797_vm4, %v919_v50, %v935_v54  ;;  %v808_v18 = vperm.slane %v800_v8, %v3767_v57 }
 0x263   : > { %v944_v62 = vperm.slane %v936_v56, %v3767_v57  ;;  %v798_v10 = vsel %vm797_vm4, %v796_v63, %v757_v45  ;;  %v945_v12 = vrot.slane %v940_v1, 4 }
 0x264   : > { %v804_v21 = vperm.slane %v798_v10, %v3767_v57  ;;  %v835_v36 = vrot.slane %v808_v18, 4 }
 0x265   : > { %v957_v7 = vrot.slane %v944_v62, 4 }
 0x266   : > { %v823_v35 = vrot.slane %v804_v21, 4 }
 0x267   : > { %v916_v3 = vpop.permute.xlu1 %915 }
 0x268   : > { %v921_v5 = vrot.slane %v916_v3, 4  ;;  %v924_v6 = vsel %vm797_vm4, %v916_v3, %v923_v0 }
 0x269   : > { %v932_v9 = vperm.slane %v924_v6, %v3767_v57 }
 0x26a   : > { %v922_v11 = vsel %vm797_vm4, %v921_v5, %v770_v46 }
 0x26b   : > { %v928_v13 = vperm.slane %v922_v11, %v3767_v57  ;;  %v958_v14 = vsel %vm797_vm4, %v957_v7, %v932_v9  ;;  %v959_v15 = vrot.slane %v932_v9, 4 }
 0x26c   : > { %v964_v19 = vperm.slane %v958_v14, %v3772_v4 }
 0x26d   : > { %v946_v22 = vsel %vm797_vm4, %v945_v12, %v928_v13  ;;  %v947_v23 = vrot.slane %v928_v13, 4  ;;  %v960_v24 = vsel %vm797_vm4, %v944_v62, %v959_v15 }
 0x26e   : > { %v952_v25 = vperm.slane %v946_v22, %v3772_v4  ;;  %v968_v26 = vperm.slane %v960_v24, %v3772_v4  ;;  %v973_v27 = vrot.slane %v964_v19, 4 }
 0x26f   : > { %v948_v29 = vsel %vm797_vm4, %v940_v1, %v947_v23  ;;  %v794_v30 = vpop.permute.xlu1 %793 }
 0x270   : > { %v956_v32 = vperm.slane %v948_v29, %v3772_v4  ;;  %v969_v33 = vrot.slane %v952_v25, 4  ;;  %v975_v34 = vrot.slane %v968_v26, 4  ;;  %v809_v37 = vrot.slane %v794_v30, 4 }
 0x271   : > { %v812_v38 = vsel %vm797_vm4, %v794_v30, %v811_v28  ;;  %v974_v41 = vsel %vm797_vm4, 0.0, %v973_v27 }
 0x272   : > { %v971_v39 = vrot.slane %v956_v32, 4  ;;  %v976_v42 = vsel %vm797_vm4, 0.0, %v975_v34  ;;  %v988_v43 = vsel %vm797_vm4, %v975_v34, %v964_v19  ;;  %v970_v44 = vsel %vm797_vm4, 0.0, %v969_v33 }
 0x273   : > { %v993_v45 = vrot.slane %v976_v42, 4  ;;  %v810_v46 = vsel %vm797_vm4, %v809_v37, %v788_v16  ;;  %v820_v47 = vperm.slane %v812_v38, %v3767_v57  ;;  %v992_v49 = vperm.slane %v988_v43, %v3767_v57 }
 0x274   : > { %v972_v48 = vsel %vm797_vm4, 0.0, %v971_v39  ;;  %v816_v50 = vperm.slane %v810_v46, %v3767_v57  ;;  %v977_v51 = vsel %vm797_vm4, %v971_v39, %v952_v25 }
 0x275   : > { %v982_v52 = vrot.slane %v972_v48, 4  ;;  %v994_v53 = vsel %vm797_vm4, %v993_v45, %v974_v41  ;;  %v833_v54 = vrot.slane %v820_v47, 4  ;;  %v836_v55 = vsel %vm797_vm4, %v820_v47, %v835_v36 }
 0x276   : > { %v998_v56 = vperm.slane %v994_v53, %v3767_v57  ;;  %v821_v58 = vrot.slane %v816_v50, 4  ;;  %v824_v59 = vsel %vm797_vm4, %v816_v50, %v823_v35  ;;  %v844_v60 = vperm.slane %v836_v55, %v3772_v4 }
 0x277   : > { %v832_v61 = vperm.slane %v824_v59, %v3772_v4  ;;  %v834_v62 = vsel %vm797_vm4, %v833_v54, %v808_v18  ;;  %v981_v63 = vperm.slane %v977_v51, %v3767_v57  ;;  %v983_v0 = vsel %vm797_vm4, %v982_v52, %v970_v44 }
 0x278   : > { %v822_v1 = vsel %vm797_vm4, %v821_v58, %v804_v21  ;;  %v840_v2 = vperm.slane %v834_v62, %v3772_v4  ;;  %v851_v3 = vrot.slane %v844_v60, 4  ;;  %v987_v5 = vperm.slane %v983_v0, %v3767_v57 }
 0x279   : > { %v828_v6 = vperm.slane %v822_v1, %v3772_v4  ;;  %v847_v7 = vrot.slane %v832_v61, 4  ;;  %v1001_v8 = vrot.slane %v981_v63, 4  ;;  %v1011_v9 = vrot.slane %v998_v56, 4 }
 0x27a   : > { %v849_v10 = vrot.slane %v840_v2, 4  ;;  %v852_v11 = vsel %vm797_vm4, 0.0, %v851_v3  ;;  %v864_v12 = vsel %vm797_vm4, %v851_v3, %v840_v2  ;;  %v999_v13 = vrot.slane %v987_v5, 4 }
 0x27b   : > { %v845_v14 = vrot.slane %v828_v6, 4  ;;  %v848_v15 = vsel %vm797_vm4, 0.0, %v847_v7  ;;  %v868_v16 = vperm.slane %v864_v12, %v3767_v57  ;;  %v869_v18 = vrot.slane %v852_v11, 4 }
 0x27c   : > { %v850_v19 = vsel %vm797_vm4, 0.0, %v849_v10  ;;  %v858_v21 = vrot.slane %v848_v15, 4  ;;  %v1000_v22 = vsel %vm797_vm4, %v999_v13, %v981_v63  ;;  %v1012_v23 = vsel %vm797_vm4, %v1011_v9, %v992_v49 }
 0x27d   : > { %v846_v24 = vsel %vm797_vm4, 0.0, %v845_v14  ;;  %v870_v25 = vsel %vm797_vm4, %v869_v18, %v850_v19  ;;  %v889_v26 = vrot.slane %v868_v16, 4  ;;  %v1006_v27 = vperm.slane %v1000_v22, %v3772_v4 }
 0x27e   : > { %v874_v28 = vperm.slane %v870_v25, %v3767_v57  ;;  %v1018_v29 = vperm.slane %v1012_v23, %v3772_v4  ;;  %v1002_v30 = vsel %vm797_vm4, %v987_v5, %v1001_v8  ;;  %v1013_v32 = vrot.slane %v992_v49, 4 }
 0x27f   : > { %v1010_v33 = vperm.slane %v1002_v30, %v3772_v4  ;;  %v1025_v34 = vrot.slane %v1006_v27, 4  ;;  %v853_v35 = vsel %vm797_vm4, %v847_v7, %v828_v6  ;;  %v859_v36 = vsel %vm797_vm4, %v858_v21, %v846_v24 }
 0x280   : > { %v1023_v37 = vrot.slane %v1018_v29, 4  ;;  %v1014_v38 = vsel %vm797_vm4, %v998_v56, %v1013_v32  ;;  %v857_v39 = vperm.slane %v853_v35, %v3767_v57  ;;  %v863_v41 = vperm.slane %v859_v36, %v3767_v57 }
 0x281   : > { %v1022_v42 = vperm.slane %v1014_v38, %v3772_v4  ;;  %v1029_v43 = vrot.slane %v1010_v33, 4  ;;  %v1026_v44 = vsel %vm797_vm4, %v1018_v29, %v1025_v34  ;;  %v887_v45 = vrot.slane %v874_v28, 4 }
 0x282   : > { %v1024_v46 = vsel %vm797_vm4, %v1023_v37, %v1006_v27  ;;  %v1032_v47 = vpack.c.bf16 %v1026_v44, %v1026_v44  ;;  %v875_v48 = vrot.slane %v863_v41, 4  ;;  %v877_v49 = vrot.slane %v857_v39, 4 }
 0x283   : > { %v1031_v50 = vpack.c.bf16 %v1024_v46, %v1024_v46  ;;  %v1027_v51 = vrot.slane %v1022_v42, 4  ;;  %v1030_v52 = vsel %vm797_vm4, %v1022_v42, %v1029_v43  ;;  %v888_v53 = vsel %vm797_vm4, %v887_v45, %v868_v16 }
 0x284   : > { %v1034_v54 = vpack.c.bf16 %v1030_v52, %v1030_v52  ;;  %v1183_v55 = vsel %vm1159_vm5, %v1032_v47, 0  ;;  %v876_v56 = vsel %vm797_vm4, %v875_v48, %v857_v39  ;;  %v894_v58 = vperm.slane %v888_v53, %v3772_v4 }
 0x285   : > { %v1164_v59 = vsel %vm1159_vm5, %v1031_v50, 0  ;;  %v882_v60 = vperm.slane %v876_v56, %v3772_v4  ;;  %v878_v61 = vsel %vm797_vm4, %v863_v41, %v877_v49  ;;  %v890_v62 = vsel %vm797_vm4, %v874_v28, %v889_v26 }
 0x286   : > { %1173 = vmatpush.bf16.xpose.msra.mxu3 %v1164_v59  ;;  %v1221_v63 = vsel %vm1159_vm5, %v1034_v54, 0  ;;  %v899_v0 = vrot.slane %v894_v58, 4  ;;  %v886_v1 = vperm.slane %v878_v61, %v3772_v4  ;;  %v1028_v2 = vsel %vm797_vm4, %v1027_v51, %v1010_v33 }
 0x287   : > { %1230 = vmatpush.bf16.xpose.msrb.mxu0 %v1221_v63  ;;  %v898_v5 = vperm.slane %v890_v62, %v3772_v4  ;;  %v1033_v7 = vpack.c.bf16 %v1028_v2, %v1028_v2  ;;  %v901_v12 = vrot.slane %v882_v60, 4  ;;  %v615_v33 = vperm.slane %v3754_v40, 2 }
 0x288   : > { %v900_v3 = vsel %vm797_vm4, %v899_v0, %v882_v60  ;;  %v905_v6 = vrot.slane %v886_v1, 4 }
 0x289   : > { %v907_v9 = vpack.c.bf16 %v900_v3, %v900_v3  ;;  %v1202_v11 = vsel %vm1159_vm5, %v1033_v7, 0  ;;  %v902_v13 = vsel %vm797_vm4, %v894_v58, %v901_v12  ;;  %v903_v15 = vrot.slane %v898_v5, 4 }
 0x28a   : > { %v906_v8 = vsel %vm797_vm4, %v898_v5, %v905_v6  ;;  %v908_v14 = vpack.c.bf16 %v902_v13, %v902_v13  ;;  %v783_v34 = vadd.f32 %v3761_v20, %v615_v33 }
 0x28b   : > { %v910_v10 = vpack.c.bf16 %v906_v8, %v906_v8  ;;  %v904_v16 = vsel %vm797_vm4, %v903_v15, %v886_v1 }
 0x28c   : > { %v909_v18 = vpack.c.bf16 %v904_v16, %v904_v16  ;;  %v1047_v2 = vrot.slane %v783_v34, 4 }
 0x28d   : > { %2610 = vmatmul.msk.bf16.vlgmr.msra.gmra.mxu3 %vm1159_vm5, %v907_v9 }
 0x28e   : > { %1192 = vmatpush.bf16.xpose.msrb.mxu3 %v1183_v55  ;;  %2613 = vmatmul.msk.bf16.vlgmr.msrb.gmra.mxu0 %vm1159_vm5, %v910_v10 }
 0x296   : > { %1211 = vmatpush.bf16.xpose.msra.mxu3 %v1202_v11 }
 0x29d   : > { %2611 = vmatmul.msk.bf16.vlgmr.msrb.gmra.mxu3 %vm1159_vm5, %v908_v14 }
 0x2ad   : > { %2612 = vmatmul.msk.bf16.vlgmr.msra.gmra.mxu3 %vm1159_vm5, %v909_v18 }
 0x30b   : > { %v1232_v19 = vpop.f32.mrf.mxu0 }
 0x30c   : > { %v1239_v21 = vmul.f32 0.17677669, %v1232_v19 }
 0x30e   : > { %v1250_v22 = vsel %vm1240_vm6, %v1239_v21, -inf }
 0x30f   : > { %1251 = vmax.xlane.f32.xlu2 %v1250_v22 }
 0x310   : > { %v1175_v23 = vpop.f32.mrf.mxu3 }
 0x311   : > { %v1236_v24 = vmul.f32 0.17677669, %v1175_v23 }
 0x313   : > { %v1234_v25 = vpop.f32.mrf.mxu0  ;;  %v1241_v26 = vsel %vm1240_vm6, %v1236_v24, -inf }
 0x317   : > { %1242 = vmax.xlane.f32.xlu2 %v1241_v26 }
 0x318   : > { %v1177_v27 = vpop.f32.mrf.mxu3 }
 0x320   : > { %v1194_v28 = vpop.f32.mrf.mxu3 }
 0x321   : > { %v1237_v29 = vmul.f32 0.17677669, %v1194_v28 }
 0x323   : > { %v1244_v30 = vsel %vm1240_vm6, %v1237_v29, -inf }
 0x324   : > { %1245 = vmax.xlane.f32.xlu0 %v1244_v30 }
 0x328   : > { %v1196_v32 = vpop.f32.mrf.mxu3 }
 0x32f   : > { %1036 = vrot.lane.b32.xlu2 %v783_v34, %s3441_s23 }
 0x330   : > { %v1213_v35 = vpop.f32.mrf.mxu3 }
 0x331   : > { %v1238_v36 = vmul.f32 0.17677669, %v1213_v35 }
 0x333   : > { %v1247_v37 = vsel %vm1240_vm6, %v1238_v36, -inf }
 0x334   : > { %1248 = vmax.xlane.f32.xlu1 %v1247_v37 }
 0x338   : > { %1042 = vrot.lane.b32.xlu0 %v783_v34, %s3440_s0  ;;  %v1215_v38 = vpop.f32.mrf.mxu3 }
 0x34d   : > { %1039 = vrot.lane.b32.xlu1 %v783_v34, %s3442_s26 }
 0x382   : > { %v1252_v39 = vpop.xlane.xlu2 %1251 }
 0x383   : > { %v1256_v43 = vsub.f32 %v1239_v21, %v1252_v39 }
 0x385   : > { %v1263_v40 = vmul.f32 1.442695, %v1256_v43 }
 0x38a   : > { %v1243_v41 = vpop.xlane.xlu2 %1242 }
 0x38b   : > { %v1253_v42 = vsub.f32 %v1236_v24, %v1243_v41 }
 0x38d   : > { %v1257_v44 = vmul.f32 1.442695, %v1253_v42 }
 0x38f   : > { %3149 = vpow2.f32 %v1257_v44 }
 0x390   : > { %3151 = vpow2.f32 %v1263_v40 }
 0x392   : > { %v1037_v59 = vpop.permute.xlu2 %1036 }
 0x393   : > { %v1059_v61 = vrot.slane %v1037_v59, 4 }
 0x395   : > { %v3867_v20 = vpop.eup %3149 }
 0x396   : > { %v1265_v45 = vsel %vm1240_vm6, %v3867_v20, 0.0  ;;  %v3871_v49 = vpop.eup %3151 }
 0x397   : > { %1266 = vadd.xlane.f32.xlu2 %v1265_v45  ;;  %v1246_v46 = vpop.xlane.xlu0 %1245  ;;  %v1274_v50 = vsel %vm1240_vm6, %v3871_v49, 0.0 }
 0x398   : > { %v1254_v47 = vsub.f32 %v1237_v29, %v1246_v46 }
 0x39a   : > { %v1259_v48 = vmul.f32 1.442695, %v1254_v47 }
 0x39c   : > { %3153 = vpow2.f32 %v1259_v48 }
 0x39f   : > { %1275 = vadd.xlane.f32.xlu2 %v1274_v50 }
 0x3a2   : > { %v3875_v51 = vpop.eup %3153 }
 0x3a3   : > { %v1268_v52 = vsel %vm1240_vm6, %v3875_v51, 0.0 }
 0x3a4   : > { %1269 = vadd.xlane.f32.xlu0 %v1268_v52 }
 0x3a7   : > { %v1249_v53 = vpop.xlane.xlu1 %1248 }
 0x3a8   : > { %v1255_v54 = vsub.f32 %v1238_v36, %v1249_v53 }
 0x3aa   : > { %v1261_v55 = vmul.f32 1.442695, %v1255_v54  ;;  %v1043_v60 = vpop.permute.xlu0 %1042 }
 0x3ab   : > { %v1057_v62 = vrot.slane %v1043_v60, 4  ;;  %v1060_v63 = vsel %vm797_vm4, %v1043_v60, %v1059_v61 }
 0x3ac   : > { %3155 = vpow2.f32 %v1261_v55  ;;  %v1068_v1 = vperm.slane %v1060_v63, %v3767_v57 }
 0x3ad   : > { %v1058_v0 = vsel %vm797_vm4, %v1057_v62, %v1037_v59 }
 0x3ae   : > { %v1064_v3 = vperm.slane %v1058_v0, %v3767_v57  ;;  %v1081_v8 = vrot.slane %v1068_v1, 4 }
 0x3b0   : > { %v1069_v11 = vrot.slane %v1064_v3, 4 }
 0x3b2   : > { %v3879_v56 = vpop.eup %3155 }
 0x3b3   : > { %v1271_v58 = vsel %vm1240_vm6, %v3879_v56, 0.0 }
 0x3b4   : > { %1272 = vadd.xlane.f32.xlu1 %v1271_v58 }
 0x3bf   : > { %v1040_v5 = vpop.permute.xlu1 %1039 }
 0x3c0   : > { %v1045_v6 = vrot.slane %v1040_v5, 4  ;;  %v1048_v7 = vsel %vm797_vm4, %v1040_v5, %v1047_v2 }
 0x3c1   : > { %v1056_v9 = vperm.slane %v1048_v7, %v3767_v57 }
 0x3c2   : > { %v1046_v10 = vsel %vm797_vm4, %v1045_v6, %v783_v34 }
 0x3c3   : > { %v1052_v12 = vperm.slane %v1046_v10, %v3767_v57  ;;  %v1082_v13 = vsel %vm797_vm4, %v1081_v8, %v1056_v9  ;;  %v1083_v14 = vrot.slane %v1056_v9, 4 }
 0x3c4   : > { %v1088_v15 = vperm.slane %v1082_v13, %v3772_v4 }
 0x3c5   : > { %v1070_v16 = vsel %vm797_vm4, %v1069_v11, %v1052_v12  ;;  %v1071_v18 = vrot.slane %v1052_v12, 4  ;;  %v1084_v19 = vsel %vm797_vm4, %v1068_v1, %v1083_v14 }
 0x3c6   : > { %v1076_v21 = vperm.slane %v1070_v16, %v3772_v4  ;;  %v1092_v22 = vperm.slane %v1084_v19, %v3772_v4  ;;  %v1097_v25 = vrot.slane %v1088_v15, 4 }
 0x3c7   : > { %v1072_v23 = vsel %vm797_vm4, %v1064_v3, %v1071_v18 }
 0x3c8   : > { %v1080_v24 = vperm.slane %v1072_v23, %v3772_v4  ;;  %v1099_v26 = vrot.slane %v1092_v22, 4  ;;  %v1093_v27 = vrot.slane %v1076_v21, 4  ;;  %v1098_v35 = vsel %vm797_vm4, 0.0, %v1097_v25 }
 0x3ca   : > { %v1095_v28 = vrot.slane %v1080_v24, 4  ;;  %v1100_v29 = vsel %vm797_vm4, 0.0, %v1099_v26  ;;  %v1112_v30 = vsel %vm797_vm4, %v1099_v26, %v1088_v15  ;;  %v1094_v42 = vsel %vm797_vm4, 0.0, %v1093_v27 }
 0x3cb   : > { %v1116_v32 = vperm.slane %v1112_v30, %v3767_v57  ;;  %v1117_v33 = vrot.slane %v1100_v29, 4 }
 0x3cc   : > { %v1096_v34 = vsel %vm797_vm4, 0.0, %v1095_v28  ;;  %v1101_v36 = vsel %vm797_vm4, %v1095_v28, %v1076_v21 }
 0x3cd   : > { %v1106_v37 = vrot.slane %v1096_v34, 4  ;;  %v1118_v38 = vsel %vm797_vm4, %v1117_v33, %v1098_v35  ;;  %v1137_v39 = vrot.slane %v1116_v32, 4  ;;  %v1105_v41 = vperm.slane %v1101_v36, %v3767_v57 }
 0x3ce   : > { %v1122_v43 = vperm.slane %v1118_v38, %v3767_v57 }
 0x3cf   : > { %v1107_v44 = vsel %vm797_vm4, %v1106_v37, %v1094_v42  ;;  %v1125_v40 = vrot.slane %v1105_v41, 4 }
 0x3d0   : > { %v1111_v45 = vperm.slane %v1107_v44, %v3767_v57  ;;  %v1138_v46 = vsel %vm797_vm4, %v1122_v43, %v1137_v39  ;;  %v1135_v47 = vrot.slane %v1122_v43, 4 }
 0x3d1   : > { %v1146_v48 = vperm.slane %v1138_v46, %v3772_v4 }
 0x3d2   : > { %v1126_v50 = vsel %vm797_vm4, %v1111_v45, %v1125_v40  ;;  %v1123_v52 = vrot.slane %v1111_v45, 4  ;;  %v1136_v53 = vsel %vm797_vm4, %v1135_v47, %v1116_v32 }
 0x3d3   : > { %v1134_v54 = vperm.slane %v1126_v50, %v3772_v4  ;;  %v1151_v55 = vrot.slane %v1146_v48, 4  ;;  %v1142_v58 = vperm.slane %v1136_v53, %v3772_v4 }
 0x3d4   : > { %v1124_v59 = vsel %vm797_vm4, %v1123_v52, %v1105_v41 }
 0x3d5   : > { %v1152_v60 = vsel %vm797_vm4, %v1151_v55, %v1134_v54  ;;  %v1130_v61 = vperm.slane %v1124_v59, %v3772_v4  ;;  %v1147_v62 = vrot.slane %v1142_v58, 4  ;;  %v1153_v63 = vrot.slane %v1134_v54, 4 }
 0x3d6   : > { %v1157_v0 = vpack.c.bf16 %v1152_v60, %v1152_v60 }
 0x3d7   : > { %v1148_v1 = vsel %vm797_vm4, %v1147_v62, %v1130_v61  ;;  %v1149_v2 = vrot.slane %v1130_v61, 4  ;;  %v1154_v3 = vsel %vm797_vm4, %v1146_v48, %v1153_v63 }
 0x3d8   : > { %v1332_v5 = vsel %vm1292_vm7, %v1157_v0, 0  ;;  %v1155_v6 = vpack.c.bf16 %v1148_v1, %v1148_v1  ;;  %v1158_v7 = vpack.c.bf16 %v1154_v3, %v1154_v3 }
 0x3d9   : > { %1341 = vmatpush.bf16.msrb.mxu3 %v1332_v5  ;;  %v1150_v8 = vsel %vm797_vm4, %v1142_v58, %v1149_v2 }
 0x3da   : > { %v1294_v9 = vsel %vm1292_vm7, %v1155_v6, 0  ;;  %v1351_v10 = vsel %vm1292_vm7, %v1158_v7, 0  ;;  %v1156_v11 = vpack.c.bf16 %v1150_v8, %v1150_v8 }
 0x3db   : > { %1303 = vmatpush.bf16.msrb.mxu2 %v1294_v9  ;;  %1360 = vmatpush.bf16.msra.mxu0 %v1351_v10 }
 0x3dc   : > { %v1313_v12 = vsel %vm1292_vm7, %v1156_v11, 0 }
 0x3df   : > { %1322 = vmatpush.bf16.msra.mxu2 %v1313_v12 }
 0x40a   : > { %v1267_v13 = vpop.xlane.xlu2 %1266 }
 0x40b   : > { %3157 = vrcp.f32 %v1267_v13 }
 0x411   : > { %v3158_v14 = vpop.eup %3157 }
 0x412   : > { %v1281_v15 = vmul.f32 %v3158_v14, %v3867_v20  ;;  %v1276_v16 = vpop.xlane.xlu2 %1275 }
 0x413   : > { %3159 = vrcp.f32 %v1276_v16 }
 0x414   : > { %v1285_v18 = vpack.c.bf16 %v1281_v15, %v1281_v15 }
 0x416   : > { %2614 = vmatmul.msk.bf16.vlgmr.msrb.gmra.mxu2 %vm1240_vm6, %v1285_v18 }
 0x417   : > { %v1270_v19 = vpop.xlane.xlu0 %1269 }
 0x418   : > { %3161 = vrcp.f32 %v1270_v19 }
 0x419   : > { %v3160_v21 = vpop.eup %3159 }
 0x41a   : > { %v1284_v22 = vmul.f32 %v3160_v21, %v3871_v49 }
 0x41c   : > { %v1288_v23 = vpack.c.bf16 %v1284_v22, %v1284_v22 }
 0x41e   : > { %v3162_v24 = vpop.eup %3161  ;;  %2617 = vmatmul.msk.bf16.vlgmr.msra.gmra.mxu0 %vm1240_vm6, %v1288_v23 }
 0x41f   : > { %v1282_v25 = vmul.f32 %v3162_v24, %v3875_v51 }
 0x421   : > { %v1286_v26 = vpack.c.bf16 %v1282_v25, %v1282_v25 }
 0x426   : > { %2615 = vmatmul.msk.bf16.vlgmr.msra.gmra.mxu2 %vm1240_vm6, %v1286_v26 }
 0x427   : > { %v1273_v20 = vpop.xlane.xlu1 %1272 }
 0x428   : > { %3163 = vrcp.f32 %v1273_v20 }
 0x42e   : > { %v3164_v27 = vpop.eup %3163 }
 0x42f   : > { %v1283_v28 = vmul.f32 %v3164_v27, %v3879_v56 }
 0x431   : > { %v1287_v29 = vpack.c.bf16 %v1283_v28, %v1283_v28 }
 0x433   : > { %2616 = vmatmul.msk.bf16.vlgmr.msrb.gmra.mxu3 %vm1240_vm6, %v1287_v29 }
 0x499   : > { %v1305_v30 = vpop.f32.mrf.mxu2 }
 0x49a   : > { %v1368_v41 = vrot.slane %v1305_v30, 4 }
 0x49b   : > { %v1362_v32 = vpop.f32.mrf.mxu0 }
 0x49c   : > { %v1378_v36 = vrot.slane %v1362_v32, 4 }
 0x4a1   : > { %v1307_v49 = vpop.f32.mrf.mxu2 }
 0x4a3   : > { %v1364_v33 = vpop.f32.mrf.mxu0 }
 0x4a9   : > { %v1324_v34 = vpop.f32.mrf.mxu2 }
 0x4aa   : > { %v1380_v35 = vrot.slane %v1324_v34, 4  ;;  %v1379_v38 = vsel %vm797_vm4, %v1378_v36, %v1324_v34 }
 0x4ab   : > { %v1385_v56 = vperm.slane %v1379_v38, %v3767_v57  ;;  %v2946_v38 = vld [vmem:[%s3664_s12 + $0x38] sm:$0xff] }
 0x4ac   : > { %v1381_v51 = vsel %vm797_vm4, %v1362_v32, %v1380_v35  ;;  %1558 = vmatpush.bf16.msrb.mxu1 %v2946_v38  ;;  %v2965_v38 = vld [vmem:[%s3649_s6 + $0x8c] sm:$0xf0] }
 0x4ad   : > { %v1389_v39 = vperm.slane %v1381_v51, %v3767_v57  ;;  %v1390_v47 = vrot.slane %v1385_v56, 4 }
 0x4af   : > { %v1402_v40 = vrot.slane %v1389_v39, 4 }
 0x4b1   : > { %v1326_v37 = vpop.f32.mrf.mxu2 }
 0x4b6   : > { %v1343_v42 = vpop.f32.mrf.mxu3 }
 0x4b7   : > { %v1366_v43 = vrot.slane %v1343_v42, 4  ;;  %v1369_v44 = vsel %vm797_vm4, %v1343_v42, %v1368_v41  ;;  %v2943_v41 = vld [vmem:[%s3664_s12 + $0x20] sm:$0xff]  ;;  %v2941_v42 = vld [vmem:[%s3664_s12 + $0x10] sm:$0xff] }
 0x4b8   : > { %v1377_v45 = vperm.slane %v1369_v44, %v3767_v57  ;;  %v2939_v44 = vld [vmem:[%s3664_s12] sm:$0xff] }
 0x4b9   : > { %v1367_v46 = vsel %vm797_vm4, %v1366_v43, %v1305_v30  ;;  %v2940_v43 = vld [vmem:[%s3664_s12 + $0x8] sm:$0xff] }
 0x4ba   : > { %v1373_v48 = vperm.slane %v1367_v46, %v3767_v57  ;;  %v1403_v50 = vsel %vm797_vm4, %v1402_v40, %v1377_v45  ;;  %v1404_v52 = vrot.slane %v1377_v45, 4 }
 0x4bb   : > { %v1409_v53 = vperm.slane %v1403_v50, %v3772_v4 }
 0x4bc   : > { %v1391_v54 = vsel %vm797_vm4, %v1390_v47, %v1373_v48  ;;  %v1392_v55 = vrot.slane %v1373_v48, 4  ;;  %v1405_v58 = vsel %vm797_vm4, %v1389_v39, %v1404_v52  ;;  %v2944_v39 = vld [vmem:[%s3664_s12 + $0x28] sm:$0xff] }
 0x4bd   : > { %v1397_v59 = vperm.slane %v1391_v54, %v3772_v4  ;;  %v1413_v60 = vperm.slane %v1405_v58, %v3772_v4  ;;  %v1418_v0 = vrot.slane %v1409_v53, 4 }
 0x4be   : > { %v1393_v61 = vsel %vm797_vm4, %v1385_v56, %v1392_v55  ;;  %v1345_v62 = vpop.f32.mrf.mxu3  ;;  %v2942_v56 = vld [vmem:[%s3664_s12 + $0x18] sm:$0xff]  ;;  %v3175_v55 = vld [vmem:[#allocation2] sm:$0xff] }
 0x4bf   : > { %v1401_v63 = vperm.slane %v1393_v61, %v3772_v4  ;;  %v1420_v1 = vrot.slane %v1413_v60, 4  ;;  %v1414_v2 = vrot.slane %v1397_v59, 4  ;;  %v1419_v10 = vsel %vm797_vm4, 0.0, %v1418_v0  ;;  %v2764_v61 = vld [vmem:[%s3649_s6 + $0xe0] sm:$0xf] }
 0x4c0   : > { %v2977_v62 = vld [vmem:[%s3649_s6 + $0xec] sm:$0xf0] }
 0x4c1   : > { %v1416_v3 = vrot.slane %v1401_v63, 4  ;;  %v1421_v5 = vsel %vm797_vm4, 0.0, %v1420_v1  ;;  %v1433_v6 = vsel %vm797_vm4, %v1420_v1, %v1409_v53  ;;  %v1415_v16 = vsel %vm797_vm4, 0.0, %v1414_v2  ;;  %v2975_v63 = vld [vmem:[%s3649_s6 + $0xe4] sm:$0xf] }
 0x4c2   : > { %v1437_v7 = vperm.slane %v1433_v6, %v3767_v57  ;;  %v1438_v8 = vrot.slane %v1421_v5, 4  ;;  %v1572_v53 = vperm.slane %v3748_v31, 0  ;;  %v2765_v0 = vor.u32 %v2977_v62, %v2764_v61  ;;  %v2766_v1 = vld [vmem:[%s3649_s6 + $0xf0] sm:$0xf0]  ;;  %v2772_v2 = vld [vmem:[%s3649_s6 + $0xe8] sm:$0xf] }
 0x4c3   : > { %v1417_v9 = vsel %vm797_vm4, 0.0, %v1416_v3  ;;  %v1422_v11 = vsel %vm797_vm4, %v1416_v3, %v1397_v59  ;;  %v2978_v3 = vld [vmem:[%s3649_s6 + $0xf4] sm:$0xf0]  ;;  %v2769_v5 = vor.u32 %v2975_v63, %v2766_v1  ;;  %v2960_v61 = vld [vmem:[%s3649_s6 + $0x6c] sm:$0xf] }
 0x4c4   : > { %v1439_v12 = vsel %vm797_vm4, %v1438_v8, %v1419_v10  ;;  %v1426_v13 = vperm.slane %v1422_v11, %v3767_v57  ;;  %v1427_v14 = vrot.slane %v1417_v9, 4  ;;  %v1458_v15 = vrot.slane %v1437_v7, 4  ;;  %v2774_v8 = vld [vmem:[%s3649_s6 + $0xf8] sm:$0xf0]  ;;  %1801 = vmatpush.bf16.msrb.mxu2 %v2765_v0  ;;  %v2684_v0 = vld [vmem:[%s3649_s6 + $0x40] sm:$0xf] }
 0x4c5   : > { %v1443_v18 = vperm.slane %v1439_v12, %v3767_v57  ;;  %v2773_v6 = vor.u32 %v2978_v3, %v2772_v2  ;;  %1814 = vmatpush.bf16.msra.mxu3 %v2769_v5  ;;  %v2710_v62 = vld [vmem:[%s3649_s6 + $0x78] sm:$0xf0]  ;;  %v2957_v1 = vld [vmem:[%s3649_s6 + $0x4c] sm:$0xf0]  ;;  %v2955_v2 = vld [vmem:[%s3649_s6 + $0x44] sm:$0xf] }
 0x4c6   : > { %v1428_v19 = vsel %vm797_vm4, %v1427_v14, %v1415_v16  ;;  %v1446_v21 = vrot.slane %v1426_v13, 4  ;;  %v2748_v14 = vld [vmem:[%s3649_s6 + $0xc0] sm:$0xf]  ;;  %v2971_v16 = vld [vmem:[%s3649_s6 + $0xc4] sm:$0xf]  ;;  %v2713_v63 = vor.u32 %v2960_v61, %v2710_v62  ;;  %v2685_v3 = vor.u32 %v2957_v1, %v2684_v0  ;;  %v2994_v61 = vld [vmem:[%s3681_s18 + $0x78] sm:$0xff] }
 0x4c7   : > { %v1432_v22 = vperm.slane %v1428_v19, %v3767_v57  ;;  %v1459_v23 = vsel %vm797_vm4, %v1443_v18, %v1458_v15  ;;  %v1456_v24 = vrot.slane %v1443_v18, 4  ;;  %1827 = vmatpush.bf16.msrb.mxu0 %v2773_v6  ;;  %v2973_v15 = vld [vmem:[%s3649_s6 + $0xcc] sm:$0xf0]  ;;  %v2750_v19 = vld [vmem:[%s3649_s6 + $0xd0] sm:$0xf0]  ;;  %v3000_v62 = vld [vmem:[%s3681_s18 + $0xa8] sm:$0xff] }
 0x4c8   : > { %v1467_v25 = vperm.slane %v1459_v23, %v3772_v4  ;;  %v2749_v18 = vor.u32 %v2973_v15, %v2748_v14  ;;  %v2753_v23 = vor.u32 %v2971_v16, %v2750_v19  ;;  %v2686_v5 = vld [vmem:[%s3649_s6 + $0x50] sm:$0xf0]  ;;  %v2692_v6 = vld [vmem:[%s3649_s6 + $0x48] sm:$0xf]  ;;  %v2953_v15 = vld [vmem:[%s3649_s6 + $0x2c] sm:$0xf0] }
 0x4c9   : > { %v1447_v26 = vsel %vm797_vm4, %v1432_v22, %v1446_v21  ;;  %v1444_v20 = vrot.slane %v1432_v22, 4  ;;  %v1457_v27 = vsel %vm797_vm4, %v1456_v24, %v1437_v7  ;;  %v2976_v7 = vld [vmem:[%s3649_s6 + $0xec] sm:$0xf]  ;;  %v2756_v21 = vld [vmem:[%s3649_s6 + $0xc8] sm:$0xf]  ;;  %v2985_v0 = vld [vmem:[%s3681_s18 + $0x30] sm:$0xff] }
 0x4ca   : > { %v1455_v28 = vperm.slane %v1447_v26, %v3772_v4  ;;  %v1472_v29 = vrot.slane %v1467_v25, 4  ;;  %v1463_v30 = vperm.slane %v1457_v27, %v3772_v4  ;;  %v2777_v9 = vor.u32 %v2976_v7, %v2774_v8  ;;  %v2974_v22 = vld [vmem:[%s3649_s6 + $0xd4] sm:$0xf0]  ;;  %v2758_v26 = vld [vmem:[%s3649_s6 + $0xd8] sm:$0xf0]  ;;  %1802 = vmatpush.bf16.msrb.mxu2 %v2749_v18  ;;  %1815 = vmatpush.bf16.msra.mxu3 %v2753_v23  ;;  %v2993_v1 = vld [vmem:[%s3681_s18 + $0x70] sm:$0xff] }
 0x4cb   : > { %v1445_v32 = vsel %vm797_vm4, %v1444_v20, %v1426_v13  ;;  %v2757_v24 = vor.u32 %v2974_v22, %v2756_v21  ;;  %v2732_v27 = vld [vmem:[%s3649_s6 + $0xa0] sm:$0xf]  ;;  %v2958_v7 = vld [vmem:[%s3649_s6 + $0x54] sm:$0xf0]  ;;  %v2689_v8 = vor.u32 %v2955_v2, %v2686_v5  ;;  %v2951_v16 = vld [vmem:[%s3649_s6 + $0x24] sm:$0xf] }
 0x4cc   : > { %v1473_v57 = vsel %vm797_vm4, %v1472_v29, %v1455_v28  ;;  %v1474_v49 = vrot.slane %v1455_v28, 4  ;;  %v1451_v33 = vperm.slane %v1445_v32, %v3772_v4  ;;  %v1468_v34 = vrot.slane %v1463_v30, 4  ;;  %v2945_v4 = vld [vmem:[%s3664_s12 + $0x30] sm:$0xff]  ;;  %v2969_v28 = vld [vmem:[%s3649_s6 + $0xac] sm:$0xf0]  ;;  %v2984_v5 = vld [vmem:[%s3681_s18 + $0x28] sm:$0xff] }
 0x4cd   : > { %1481 = vrot.lane.b32.xlu2 %v1473_v57, %s3442_s26  ;;  %1559 = vmatpush.bf16.msrb.mxu1 %v2945_v4  ;;  %v2967_v29 = vld [vmem:[%s3649_s6 + $0xa4] sm:$0xf]  ;;  %v2734_v32 = vld [vmem:[%s3649_s6 + $0xb0] sm:$0xf0]  ;;  %v2740_v57 = vld [vmem:[%s3649_s6 + $0xa8] sm:$0xf] }
 0x4ce   : > { %v1475_v35 = vsel %vm797_vm4, %v1467_v25, %v1474_v49  ;;  %v1470_v36 = vrot.slane %v1451_v33, 4  ;;  %v1469_v51 = vsel %vm797_vm4, %v1468_v34, %v1451_v33  ;;  %v2972_v25 = vld [vmem:[%s3649_s6 + $0xcc] sm:$0xf]  ;;  %1828 = vmatpush.bf16.msrb.mxu0 %v2757_v24  ;;  %v2970_v49 = vld [vmem:[%s3649_s6 + $0xb4] sm:$0xf0]  ;;  %v2737_v33 = vor.u32 %v2967_v29, %v2734_v32  ;;  %v2999_v2 = vld [vmem:[%s3681_s18 + $0xa0] sm:$0xff] }
 0x4cf   : > { %1485 = vrot.lane.b32.xlu0 %v1475_v35, %s3441_s23  ;;  %v2761_v20 = vor.u32 %v2972_v25, %v2758_v26  ;;  %v2741_v34 = vor.u32 %v2970_v49, %v2740_v57  ;;  %v2968_v35 = vld [vmem:[%s3649_s6 + $0xac] sm:$0xf]  ;;  %v2963_v4 = vld [vmem:[%s3649_s6 + $0x84] sm:$0xf]  ;;  %v2670_v18 = vld [vmem:[%s3649_s6 + $0x30] sm:$0xf0] }
 0x4d0   : > { %v1471_v37 = vsel %vm797_vm4, %v1463_v30, %v1470_v36  ;;  %v2733_v30 = vor.u32 %v2969_v28, %v2732_v27  ;;  %v2742_v36 = vld [vmem:[%s3649_s6 + $0xb8] sm:$0xf0]  ;;  %1816 = vmatpush.bf16.msra.mxu3 %v2737_v33  ;;  %v2676_v21 = vld [vmem:[%s3649_s6 + $0x28] sm:$0xf]  ;;  %v2954_v22 = vld [vmem:[%s3649_s6 + $0x34] sm:$0xf0]  ;;  %v2673_v24 = vor.u32 %v2951_v16, %v2670_v18 }
 0x4d1   : > { %1477 = vrot.lane.b32.xlu1 %v1471_v37, %s3440_s0  ;;  %1560 = vmatpush.bf16.msrb.mxu1 %v2944_v39  ;;  %v2716_v37 = vld [vmem:[%s3649_s6 + $0x80] sm:$0xf]  ;;  %v2952_v23 = vld [vmem:[%s3649_s6 + $0x2c] sm:$0xf]  ;;  %v2677_v25 = vor.u32 %v2954_v22, %v2676_v21  ;;  %v2678_v26 = vld [vmem:[%s3649_s6 + $0x38] sm:$0xf0] }
 0x4d2   : > { %1803 = vmatpush.bf16.msrb.mxu2 %v2733_v30  ;;  %1829 = vmatpush.bf16.msrb.mxu0 %v2741_v34  ;;  %v2717_v39 = vor.u32 %v2965_v38, %v2716_v37  ;;  %v2949_v27 = vld [vmem:[%s3649_s6 + $0xc] sm:$0xf0]  ;;  %v2681_v28 = vor.u32 %v2952_v23, %v2678_v26  ;;  %v2947_v29 = vld [vmem:[%s3649_s6 + $0x4] sm:$0xf]  ;;  %v2654_v30 = vld [vmem:[%s3649_s6 + $0x10] sm:$0xf0] }
 0x4d3   : > { %v2660_v32 = vld [vmem:[%s3649_s6 + $0x8] sm:$0xf]  ;;  %v2950_v57 = vld [vmem:[%s3649_s6 + $0x14] sm:$0xf0]  ;;  %v2948_v49 = vld [vmem:[%s3649_s6 + $0xc] sm:$0xf] }
 0x4d4   : > { %v2662_v33 = vld [vmem:[%s3649_s6 + $0x18] sm:$0xf0]  ;;  %v2996_v16 = vld [vmem:[%s3681_s18 + $0x88] sm:$0xff]  ;;  %v2989_v21 = vld [vmem:[%s3681_s18 + $0x50] sm:$0xff] }
 0x4d5   : > { %1561 = vmatpush.bf16.msrb.mxu1 %v2943_v41  ;;  %v2718_v41 = vld [vmem:[%s3649_s6 + $0x90] sm:$0xf0]  ;;  %v2665_v38 = vor.u32 %v2948_v49, %v2662_v33  ;;  %v3004_v18 = vld [vmem:[%s3681_s18 + $0xc8] sm:$0xff]  ;;  %v1631_v22 = vld [vmem:[%s3674_s8] sm:$0xf] }
 0x4d6   : > { %1804 = vmatpush.bf16.msrb.mxu2 %v2717_v39  ;;  %v3010_v39 = vld [vmem:[%s3681_s18 + $0xf8] sm:$0xff]  ;;  %v2995_v23 = vld [vmem:[%s3681_s18 + $0x80] sm:$0xff]  ;;  %v1636_v26 = vperm.slane %v1631_v22, 3  ;;  %v1633_v33 = vperm.slane %v1631_v22, 0 }
 0x4d7   : > { %v2987_v49 = vld [vmem:[%s3681_s18 + $0x40] sm:$0xff] }
 0x4d9   : > { %1562 = vmatpush.bf16.msrb.mxu1 %v2942_v56  ;;  %v2724_v56 = vld [vmem:[%s3649_s6 + $0x88] sm:$0xf] }
 0x4dd   : > { %1563 = vmatpush.bf16.msrb.mxu1 %v2941_v42  ;;  %v2966_v42 = vld [vmem:[%s3649_s6 + $0x94] sm:$0xf0] }
 0x4e1   : > { %1564 = vmatpush.bf16.msrb.mxu1 %v2940_v43  ;;  %v2721_v43 = vor.u32 %v2963_v4, %v2718_v41  ;;  %v3002_v4 = vld [vmem:[%s3681_s18 + $0xb8] sm:$0xff] }
 0x4e3   : > { %1817 = vmatpush.bf16.msra.mxu3 %v2721_v43 }
 0x4e5   : > { %1565 = vmatpush.bf16.msrb.mxu1 %v2939_v44  ;;  %v2725_v44 = vor.u32 %v2966_v42, %v2724_v56 }
 0x4e7   : > { %1830 = vmatpush.bf16.msrb.mxu0 %v2725_v44 }
 0x4e9   : > { %1840 = vmatpush.bf16.msra.mxu1 %v2777_v9  ;;  %v2693_v9 = vor.u32 %v2958_v7, %v2692_v6  ;;  %v2992_v6 = vld [vmem:[%s3681_s18 + $0x68] sm:$0xff]  ;;  %v2998_v7 = vld [vmem:[%s3681_s18 + $0x98] sm:$0xff] }
 0x4ed   : > { %1841 = vmatpush.bf16.msra.mxu1 %v2761_v20  ;;  %v2652_v20 = vld [vmem:[%s3649_s6] sm:$0xf] }
 0x4ee   : > { %v2653_v34 = vor.u32 %v2949_v27, %v2652_v20  ;;  %v2980_v20 = vld [vmem:[%s3681_s18 + $0x8] sm:$0xff] }
 0x4ef   : > { %v2988_v27 = vld [vmem:[%s3681_s18 + $0x48] sm:$0xff] }
 0x527   : > { %v1482_v45 = vpop.permute.xlu2 %1481 }
 0x541   : > { %v1486_v47 = vpop.permute.xlu0 %1485 }
 0x543   : > { %v1478_v40 = vpop.permute.xlu1 %1477 }
 0x544   : > { %v1488_v46 = vsel %vm1159_vm5, %v1469_v51, %v1478_v40  ;;  %v2745_v51 = vor.u32 %v2968_v35, %v2742_v36  ;;  %v2964_v40 = vld [vmem:[%s3649_s6 + $0x8c] sm:$0xf]  ;;  %v2657_v36 = vor.u32 %v2947_v29, %v2654_v30 }
 0x545   : > { %v1490_v48 = vsel %vm1489_vm8, %v1488_v46, %v1482_v45  ;;  %v2726_v45 = vld [vmem:[%s3649_s6 + $0x98] sm:$0xf0] }
 0x546   : > { %v1492_v50 = vsel %vm1491_vm9, %v1490_v48, %v1486_v47  ;;  %1842 = vmatpush.bf16.msra.mxu1 %v2745_v51  ;;  %v2729_v46 = vor.u32 %v2964_v40, %v2726_v45  ;;  %v2700_v47 = vld [vmem:[%s3649_s6 + $0x60] sm:$0xf]  ;;  %v2961_v48 = vld [vmem:[%s3649_s6 + $0x6c] sm:$0xf0]  ;;  %v2661_v51 = vor.u32 %v2950_v57, %v2660_v32 }
 0x547   : > { %v1493_v52 = vpack.c.bf16 %v1492_v50, %v1492_v50  ;;  %v2959_v50 = vld [vmem:[%s3649_s6 + $0x64] sm:$0xf] }
 0x548   : > { %v2979_v57 = vld [vmem:[%s3681_s18] sm:$0xff] }
 0x549   : > { %1566 = vmatmul.bf16.vlgmr.msrb.gmra.mxu1 %v1493_v52  ;;  %v2701_v52 = vor.u32 %v2961_v48, %v2700_v47 }
 0x54a   : > { %1843 = vmatpush.bf16.msra.mxu1 %v2729_v46  ;;  %v4065_v46 = vld [vmem:[%s3679_s1] sm:$0xff] }
 0x54b   : > { %1805 = vmatpush.bf16.msrb.mxu2 %v2701_v52  ;;  %v1594_v47 = vperm.slane %v4065_v46, 4  ;;  %v1596_v52 = vperm.slane %v4065_v46, 5 }
 0x54e   : > { %1844 = vmatpush.bf16.msra.mxu1 %v2713_v63  ;;  %v3008_v63 = vld [vmem:[%s3681_s18 + $0xe8] sm:$0xff] }
 0x54f   : > { %1806 = vmatpush.bf16.msrb.mxu2 %v2685_v3  ;;  %v3007_v3 = vld [vmem:[%s3681_s18 + $0xe0] sm:$0xff] }
 0x5c6   : > { %v1567_v54 = vpop.f32.mrf.mxu1 }
 0x5c7   : > { %v1571_v58 = vadd.f32 %v3175_v55, %v1567_v54  ;;  %v2708_v54 = vld [vmem:[%s3649_s6 + $0x68] sm:$0xf]  ;;  %v2962_v55 = vld [vmem:[%s3649_s6 + $0x74] sm:$0xf0] }
 0x5c9   : > { %v3988_v59 = vadd.f32 %v1572_v53, %v1571_v58  ;;  %v2702_v53 = vld [vmem:[%s3649_s6 + $0x70] sm:$0xf0] }
 0x5ca   : > { %v2705_v58 = vor.u32 %v2959_v50, %v2702_v53 }
 0x5cb   : > { %1574 = vadd.xlane.f32.xlu1 %v3988_v59 }
 0x5cc   : > { %1818 = vmatpush.bf16.msra.mxu3 %v2705_v58  ;;  %v3001_v58 = vld [vmem:[%s3681_s18 + $0xb0] sm:$0xff] }
 0x5ce   : > { %v1569_v60 = vpop.f32.mrf.mxu1 }
 0x5cf   : > { %v2709_v60 = vor.u32 %v2962_v55, %v2708_v54 }
 0x5d0   : > { %1819 = vmatpush.bf16.msra.mxu3 %v2689_v8  ;;  %v3006_v8 = vld [vmem:[%s3681_s18 + $0xd8] sm:$0xff] }
 0x5d1   : > { %1831 = vmatpush.bf16.msrb.mxu0 %v2709_v60  ;;  %v3009_v60 = vld [vmem:[%s3681_s18 + $0xf0] sm:$0xff] }
 0x5d4   : > { %1820 = vmatpush.bf16.msra.mxu3 %v2673_v24  ;;  %v3003_v24 = vld [vmem:[%s3681_s18 + $0xc0] sm:$0xff] }
 0x5d5   : > { %1832 = vmatpush.bf16.msrb.mxu0 %v2693_v9  ;;  %v2983_v9 = vld [vmem:[%s3681_s18 + $0x20] sm:$0xff] }
 0x5d8   : > { %1821 = vmatpush.bf16.msra.mxu3 %v2657_v36 }
 0x5d9   : > { %1833 = vmatpush.bf16.msrb.mxu0 %v2677_v25  ;;  %v1635_v25 = vperm.slane %v1631_v22, 2 }
 0x5dc   : > { %2163 = vmatpush.bf16.msrb.mxu3 %v2994_v61 }
 0x5dd   : > { %1834 = vmatpush.bf16.msrb.mxu0 %v2661_v51 }
 0x5e0   : > { %2164 = vmatpush.bf16.msrb.mxu3 %v2993_v1 }
 0x5e1   : > { %2176 = vmatpush.bf16.msra.mxu0 %v3002_v4 }
 0x5e4   : > { %2165 = vmatpush.bf16.msrb.mxu3 %v2992_v6 }
 0x5e5   : > { %2177 = vmatpush.bf16.msra.mxu0 %v3001_v58 }
 0x5e9   : > { %2178 = vmatpush.bf16.msra.mxu0 %v3000_v62 }
 0x5ed   : > { %2179 = vmatpush.bf16.msra.mxu0 %v2999_v2 }
 0x5f1   : > { %2180 = vmatpush.bf16.msra.mxu0 %v2998_v7 }
 0x63e   : > { %v1575_v10 = vpop.xlane.xlu1 %1574 }
 0x63f   : > { %v1576_v11 = vmul.f32 %v1575_v10, %v3697_v17  ;;  %v2956_v10 = vld [vmem:[%s3649_s6 + $0x4c] sm:$0xf] }
 0x641   : > { %v4001_v12 = vsub.f32 %v3988_v59, %v1576_v11  ;;  %v2694_v11 = vld [vmem:[%s3649_s6 + $0x58] sm:$0xf0] }
 0x642   : > { %v2697_v14 = vor.u32 %v2956_v10, %v2694_v11  ;;  %v2991_v10 = vld [vmem:[%s3681_s18 + $0x60] sm:$0xff]  ;;  %v2997_v11 = vld [vmem:[%s3681_s18 + $0x90] sm:$0xff] }
 0x643   : > { %v1578_v13 = vmul.f32 %v4001_v12, %v4001_v12  ;;  %2166 = vmatpush.bf16.msrb.mxu3 %v2991_v10  ;;  %2181 = vmatpush.bf16.msra.mxu0 %v2997_v11 }
 0x644   : > { %1845 = vmatpush.bf16.msra.mxu1 %v2697_v14  ;;  %v2982_v14 = vld [vmem:[%s3681_s18 + $0x18] sm:$0xff] }
 0x645   : > { %1579 = vadd.xlane.f32.xlu0 %v1578_v13  ;;  %v2668_v13 = vld [vmem:[%s3649_s6 + $0x20] sm:$0xf] }
 0x646   : > { %v2669_v19 = vor.u32 %v2953_v15, %v2668_v13  ;;  %v3005_v13 = vld [vmem:[%s3681_s18 + $0xd0] sm:$0xff]  ;;  %v2990_v15 = vld [vmem:[%s3681_s18 + $0x58] sm:$0xff] }
 0x647   : > { %2167 = vmatpush.bf16.msrb.mxu3 %v2990_v15  ;;  %2182 = vmatpush.bf16.msra.mxu0 %v2996_v16 }
 0x648   : > { %1807 = vmatpush.bf16.msrb.mxu2 %v2669_v19  ;;  %1846 = vmatpush.bf16.msra.mxu1 %v2681_v28  ;;  %v2981_v19 = vld [vmem:[%s3681_s18 + $0x10] sm:$0xff] }
 0x64b   : > { %2168 = vmatpush.bf16.msrb.mxu3 %v2989_v21  ;;  %2183 = vmatpush.bf16.msra.mxu0 %v2995_v23 }
 0x64c   : > { %1808 = vmatpush.bf16.msrb.mxu2 %v2653_v34  ;;  %1847 = vmatpush.bf16.msra.mxu1 %v2665_v38  ;;  %v1634_v34 = vperm.slane %v1631_v22, 1 }
 0x64f   : > { %2169 = vmatpush.bf16.msrb.mxu3 %v2988_v27  ;;  %v1957_v27 = vperm.slane %v4065_v46, 1 }
 0x650   : > { %2189 = vmatpush.bf16.msrb.mxu1 %v3010_v39 }
 0x653   : > { %2170 = vmatpush.bf16.msrb.mxu3 %v2987_v49 }
 0x654   : > { %2190 = vmatpush.bf16.msrb.mxu1 %v3009_v60 }
 0x658   : > { %2191 = vmatpush.bf16.msrb.mxu1 %v3008_v63 }
 0x65c   : > { %2192 = vmatpush.bf16.msrb.mxu1 %v3007_v3 }
 0x660   : > { %2193 = vmatpush.bf16.msrb.mxu1 %v3006_v8 }
 0x664   : > { %2194 = vmatpush.bf16.msrb.mxu1 %v3005_v13 }
 0x668   : > { %2195 = vmatpush.bf16.msrb.mxu1 %v3004_v18 }
 0x66c   : > { %2196 = vmatpush.bf16.msrb.mxu1 %v3003_v24 }
 0x6b8   : > { %v1580_v35 = vpop.xlane.xlu0 %1579 }
 0x6b9   : > { %v1581_v37 = vmul.f32 %v1580_v35, %v3697_v17 }
 0x6bb   : > { %v1582_v41 = vadd.f32 1e-05, %v1581_v37 }
 0x6bd   : > { %3165 = vrsqrt.f32 %v1582_v41  ;;  %vm1589_vm11 = vweird.f32 %v1582_v41 }
 0x6c3   : > { %v3166_v56 = vpop.eup %3165 }
 0x6c4   : > { %v1584_v42 = vmul.f32 %v3166_v56, %v1582_v41  ;;  %vm1590_vm10 = vweird.f32 %v3166_v56 }
 0x6c5   : > { %vm1591_vm12 = vmor %vm1589_vm11, %vm1590_vm10 }
 0x6c6   : > { %v1585_v43 = vmul.f32 %v3166_v56, %v1584_v42 }
 0x6c8   : > { %v1586_v44 = vmul.f32 0.5, %v1585_v43 }
 0x6ca   : > { %v1587_v40 = vsub.f32 1.5, %v1586_v44 }
 0x6cc   : > { %v1588_v45 = vmul.f32 %v3166_v56, %v1587_v40 }
 0x6ce   : > { %v1592_v48 = vsel %vm1591_vm12, %v3166_v56, %v1588_v45 }
 0x6cf   : > { %v1593_v50 = vmul.f32 %v1592_v48, %v4001_v12  ;;  %v2986_v12 = vld [vmem:[%s3681_s18 + $0x38] sm:$0xff] }
 0x6d0   : > { %2150 = vmatpush.bf16.msra.mxu2 %v2986_v12 }
 0x6d1   : > { %v1595_v53 = vmul.f32 %v1594_v47, %v1593_v50 }
 0x6d3   : > { %v1597_v54 = vadd.f32 %v1596_v52, %v1595_v53 }
 0x6d4   : > { %2151 = vmatpush.bf16.msra.mxu2 %v2985_v0 }
 0x6d5   : > { %v1598_v55 = vpack.c.bf16 %v1597_v54, %v1597_v54 }
 0x6d7   : > { %1809 = vmatmul.bf16.vlgmr.msrb.gmra.mxu2 %v1598_v55  ;;  %1822 = vmatmul.bf16.vlgmr.msra.gmra.mxu3 %v1598_v55 }
 0x6d8   : > { %1835 = vmatmul.bf16.vlgmr.msrb.gmra.mxu0 %v1598_v55  ;;  %1848 = vmatmul.bf16.vlgmr.msra.gmra.mxu1 %v1598_v55 }
 0x6d9   : > { %2152 = vmatpush.bf16.msra.mxu2 %v2984_v5 }
 0x6dd   : > { %2153 = vmatpush.bf16.msra.mxu2 %v2983_v9 }
 0x6e1   : > { %2154 = vmatpush.bf16.msra.mxu2 %v2982_v14 }
 0x6e5   : > { %2155 = vmatpush.bf16.msra.mxu2 %v2981_v19 }
 0x6e9   : > { %2156 = vmatpush.bf16.msra.mxu2 %v2980_v20 }
 0x6ed   : > { %2157 = vmatpush.bf16.msra.mxu2 %v2979_v57 }
 0x755   : > { %v1836_v28 = vpop.f32.mrf.mxu0  ;;  %v1849_v29 = vpop.f32.mrf.mxu1 }
 0x756   : > { %v1837_v30 = vadd.f32 %v1836_v28, %v1635_v25  ;;  %v1850_v32 = vadd.f32 %v1849_v29, %v1636_v26 }
 0x758   : > { %v1855_v35 = vmul.f32 %v1837_v30, %v1837_v30  ;;  %v1856_v36 = vmul.f32 %v1850_v32, %v1850_v32 }
 0x75a   : > { %v1859_v51 = vmul.f32 %v1855_v35, %v1837_v30  ;;  %v1860_v37 = vmul.f32 %v1856_v36, %v1850_v32  ;;  %v1810_v38 = vpop.f32.mrf.mxu2  ;;  %v1823_v4 = vpop.f32.mrf.mxu3 }
 0x75b   : > { %v1811_v39 = vadd.f32 %v1810_v38, %v1633_v33  ;;  %v1824_v41 = vadd.f32 %v1823_v4, %v1634_v34 }
 0x75c   : > { %v1863_v56 = vmul.f32 0.044715, %v1859_v51  ;;  %v1864_v42 = vmul.f32 0.044715, %v1860_v37 }
 0x75d   : > { %v1853_v43 = vmul.f32 %v1811_v39, %v1811_v39  ;;  %v1854_v44 = vmul.f32 %v1824_v41, %v1824_v41  ;;  %v1838_v40 = vpop.f32.mrf.mxu0  ;;  %v1851_v45 = vpop.f32.mrf.mxu1 }
 0x75e   : > { %v1867_v47 = vadd.f32 %v1863_v56, %v1837_v30  ;;  %v1868_v48 = vadd.f32 %v1864_v42, %v1850_v32 }
 0x75f   : > { %v1857_v50 = vmul.f32 %v1853_v43, %v1811_v39  ;;  %v1858_v52 = vmul.f32 %v1854_v44, %v1824_v41 }
 0x760   : > { %v1871_v53 = vmul.f32 0.7978846, %v1867_v47  ;;  %v1872_v54 = vmul.f32 0.7978846, %v1868_v48 }
 0x761   : > { %v1861_v55 = vmul.f32 0.044715, %v1857_v50  ;;  %v1862_v58 = vmul.f32 0.044715, %v1858_v52 }
 0x762   : > { %3167 = vtanh.f32 %v1871_v53  ;;  %v1812_v60 = vpop.f32.mrf.mxu2  ;;  %v1825_v12 = vpop.f32.mrf.mxu3 }
 0x763   : > { %3169 = vtanh.f32 %v1872_v54  ;;  %v1865_v61 = vadd.f32 %v1861_v55, %v1811_v39  ;;  %v1866_v62 = vadd.f32 %v1862_v58, %v1824_v41 }
 0x765   : > { %v1869_v63 = vmul.f32 0.7978846, %v1865_v61  ;;  %v1870_v0 = vmul.f32 0.7978846, %v1866_v62 }
 0x767   : > { %3171 = vtanh.f32 %v1869_v63 }
 0x768   : > { %v3168_v1 = vpop.eup %3167  ;;  %3173 = vtanh.f32 %v1870_v0 }
 0x769   : > { %v3170_v2 = vpop.eup %3169  ;;  %v1879_v3 = vadd.f32 1.0, %v3168_v1 }
 0x76a   : > { %v1880_v5 = vadd.f32 1.0, %v3170_v2 }
 0x76b   : > { %v1883_v6 = vmul.f32 0.5, %v1879_v3 }
 0x76c   : > { %v1884_v7 = vmul.f32 0.5, %v1880_v5 }
 0x76d   : > { %v3172_v8 = vpop.eup %3171  ;;  %v1887_v9 = vmul.f32 %v1883_v6, %v1837_v30 }
 0x76e   : > { %v3174_v10 = vpop.eup %3173  ;;  %v1888_v11 = vmul.f32 %v1884_v7, %v1850_v32  ;;  %v1877_v13 = vadd.f32 1.0, %v3172_v8 }
 0x76f   : > { %v1891_v14 = vpack.c.bf16 %v1887_v9, %v1887_v9  ;;  %v1878_v15 = vadd.f32 1.0, %v3174_v10 }
 0x770   : > { %v1892_v16 = vpack.c.bf16 %v1888_v11, %v1888_v11  ;;  %v1881_v18 = vmul.f32 0.5, %v1877_v13 }
 0x771   : > { %2184 = vmatmul.bf16.vlgmr.msra.gmra.mxu0 %v1891_v14  ;;  %v1882_v19 = vmul.f32 0.5, %v1878_v15 }
 0x772   : > { %2197 = vmatmul.bf16.vlgmr.msrb.gmra.mxu1 %v1892_v16  ;;  %v1885_v21 = vmul.f32 %v1881_v18, %v1811_v39 }
 0x773   : > { %v1886_v22 = vmul.f32 %v1882_v19, %v1824_v41 }
 0x774   : > { %v1889_v23 = vpack.c.bf16 %v1885_v21, %v1885_v21 }
 0x775   : > { %v1890_v24 = vpack.c.bf16 %v1886_v22, %v1886_v22 }
 0x776   : > { %2158 = vmatmul.bf16.vlgmr.msra.gmra.mxu2 %v1889_v23 }
 0x777   : > { %2171 = vmatmul.bf16.vlgmr.msrb.gmra.mxu3 %v1890_v24 }
 0x7ee   : > { %v2185_v25 = vpop.f32.mrf.mxu0 }
 0x7ef   : > { %v2198_v26 = vpop.f32.mrf.mxu1 }
 0x7f6   : > { %v2187_v20 = vpop.f32.mrf.mxu0 }
 0x7f7   : > { %v2200_v28 = vpop.f32.mrf.mxu1 }
 0x7f9   : > { %v2159_v29 = vpop.f32.mrf.mxu2 }
 0x7fa   : > { %v2160_v30 = vadd.f32 %v2159_v29, %v1957_v27  ;;  %v2172_v32 = vpop.f32.mrf.mxu3 }
 0x7fc   : > { %v2173_v57 = vadd.f32 %v2172_v32, %v2160_v30 }
 0x7fe   : > { %v2186_v49 = vadd.f32 %v2185_v25, %v2173_v57 }
 0x800   : > { %v2199_v33 = vadd.f32 %v2198_v26, %v2186_v49  ;;  %2207 = sbr.rel (%p2906_p9) target bundleno = 2334 (0x91e), region = 102 }
 0x801   : > { %v2161_v34 = vpop.f32.mrf.mxu2 }
 0x802   : > { %v2202_v35 = vadd.f32 %v2199_v33, %v3988_v59  ;;  %v2174_v36 = vpop.f32.mrf.mxu3 }
 0x804   : > { %2203 = vst [vmem:[#allocation2] sm:$0xff] %v2202_v35 }
 0x805   : > { %2208 = vadd.xlane.f32.xlu0 %v2202_v35  ;;  %v3445_v59 = vmov 8.0   ;;  %v2228_v48 = vperm.slane %v3748_v31, 6  ;;  %v2230_v53 = vperm.slane %v3748_v31, 7 }
 0x878   : > { %v2209_v51 = vpop.xlane.xlu0 %2208 }
 0x879   : > { %v2210_v37 = vmul.f32 %v2209_v51, %v3697_v17 }
 0x87b   : > { %v2211_v46 = vsub.f32 %v2202_v35, %v2210_v37 }
 0x87d   : > { %v2212_v38 = vmul.f32 %v2211_v46, %v2211_v46 }
 0x87f   : > { %2213 = vadd.xlane.f32.xlu0 %v2212_v38 }
 0x8f2   : > { %v2214_v4 = vpop.xlane.xlu0 %2213 }
 0x8f3   : > { %v2215_v39 = vmul.f32 %v2214_v4, %v3697_v17 }
 0x8f5   : > { %v2216_v41 = vadd.f32 1e-05, %v2215_v39 }
 0x8f7   : > { %3177 = vrsqrt.f32 %v2216_v41  ;;  %vm2223_vm14 = vweird.f32 %v2216_v41 }
 0x8f8   : > { %3179 = vrcp.f32 %v3445_v59 }
 0x8fd   : > { %v3178_v56 = vpop.eup %3177 }
 0x8fe   : > { %v2218_v42 = vmul.f32 %v3178_v56, %v2216_v41  ;;  %vm2224_vm13 = vweird.f32 %v3178_v56  ;;  %v3180_v45 = vpop.eup %3179 }
 0x8ff   : > { %vm2225_vm15 = vmor %vm2223_vm14, %vm2224_vm13  ;;  %v2240_v52 = vmul.f32 8.0, %v3180_v45  ;;  %vm2244_vm0 = vweird.f32 %v3180_v45 }
 0x900   : > { %v2219_v43 = vmul.f32 %v3178_v56, %v2218_v42 }
 0x901   : > { %v2241_v55 = vsub.f32 1.0, %v2240_v52 }
 0x902   : > { %v2220_v44 = vmul.f32 0.5, %v2219_v43 }
 0x903   : > { %v2242_v12 = vmul.f32 %v3180_v45, %v2241_v55 }
 0x904   : > { %v2221_v40 = vsub.f32 1.5, %v2220_v44 }
 0x905   : > { %v2243_v63 = vadd.f32 %v3180_v45, %v2242_v12 }
 0x906   : > { %v2222_v47 = vmul.f32 %v3178_v56, %v2221_v40 }
 0x907   : > { %v2245_v2 = vsel %vm2244_vm0, %v3180_v45, %v2243_v63 }
 0x908   : > { %v2226_v50 = vsel %vm2225_vm15, %v3178_v56, %v2222_v47 }
 0x909   : > { %v2227_v17 = vmul.f32 %v2226_v50, %v2211_v46 }
 0x90b   : > { %v2229_v54 = vmul.f32 %v2228_v48, %v2227_v17 }
 0x90d   : > { %v2231_v58 = vadd.f32 %v2230_v53, %v2229_v54 }
 0x90f   : > { %2232 = vst [vmem:[%s3683_s29] sm:$0xff] %v2231_v58  ;;  %v2233_v60 = vrot.slane %v2231_v58, 4 }
 0x911   : > { %v2234_v61 = vadd.f32 %v2233_v60, %v2231_v58 }
 0x913   : > { %v2235_v62 = vrot.slane %v2234_v61, 2 }
 0x915   : > { %v2236_v0 = vadd.f32 %v2235_v62, %v2234_v61 }
 0x917   : > { %v2237_v1 = vrot.slane %v2236_v0, 1 }
 0x919   : > { %v2238_v3 = vadd.f32 %v2237_v1, %v2236_v0 }
 0x91b   : > { %v2246_v5 = vmul.f32 %v2245_v2, %v2238_v3 }
 0x91d   : > { %2247 = vst [vmem:[%s483_s27] sm:$0x1] %v2246_v5 }
 0x91e PF: > { %s2908_s15 = sshll.u32 %s3419_s16, 3  ;;  %s4232_s12 = sld [smem:[#allocation34_spill]] }
 0x91f   : > { %s2265_s8 = sshll.u32 %s3683_s29, 4  ;;  %s2249_s24 = scalar_lea.sflag [#allocation6], %s3656_s19  ;;  %s2266_s8 = int_to_ptr.vmem [resolvable:$true] %s2265_s8 }
 0x924   : > { %s4233_s9 = smov %s4232_s12  ;;  %s2263_s11 = scalar_lea.hbm %s4232_s12, %s2908_s15 }
 0x925   : > { %s2267_s30 = sshll.u32 %s2263_s11, 4  ;;  %s3291_s21 = scalar_lea.hbm %s4233_s9, 16  ;;  %s2268_s30 = int_to_ptr.hbm [resolvable:$true] %s2267_s30 }
 0x926   : > { %s3285_s4 = sshra.s32 %s2268_s30, 4  ;;  %s3286_s4 = int_to_ptr.hbm [resolvable:$true] %s3285_s4 }
 0x927   : > { %s3287_s18 = scalar_lea.hbm %s3286_s4, 8  ;;  %p3292_p0 = scmp.lt.s32.totalorder %s3286_s4, %s4233_s9 }
 0x928   : > { %p3288_p10 = scmp.ne.s32.totalorder %s3286_s4, %s3287_s18  ;;  %p3293_p1 = scmp.lt.s32.totalorder %s3291_s21, %s3287_s18 }
 0x92a   : > { %p3289_p11 = pnand %p3288_p10, %p3588_p12  ;;  %p3294_p4 = por %p3293_p1, %p3292_p0 }
 0x92c   : > { %p3290_p13 = pneg %p3289_p11 }
 0x92e   : > { %p3295_p3 = pnand %p3294_p4, %p3290_p13 }
 0x930   : > { %3298 = shalt.err (!%p3295_p3)
}
 0x931   : > { %3021 = dma.vmem_to_hbm [thread:$0]  (%p3588_p12), %s2266_s8, 128, %s2268_s30, %s2249_s24  }
 0x932   : > { %s4234_s23 = sld [smem:[#allocation35_spill]]  ;;  %s2278_s15 = sshll.u32 %s483_s27, 4  ;;  %s2279_s15 = int_to_ptr.vmem [resolvable:$true] %s2278_s15 }
 0x933   : > { %s2254_s14 = scalar_lea.sflag [#allocation12], %s3656_s19 }
 0x938   : > { %s2276_s26 = scalar_lea.hbm %s4234_s23, %s3419_s16  ;;  %s3319_s8 = scalar_lea.hbm %s4234_s23, 2 }
 0x939   : > { %s2280_s6 = sshll.u32 %s2276_s26, 4  ;;  %s2281_s6 = int_to_ptr.hbm [resolvable:$true] %s2280_s6 }
 0x93a   : > { %s3313_s12 = sshra.s32 %s2281_s6, 4  ;;  %s3314_s12 = int_to_ptr.hbm [resolvable:$true] %s3313_s12 }
 0x93b   : > { %s3315_s11 = scalar_lea.hbm %s3314_s12, 1  ;;  %p3320_p8 = scmp.lt.s32.totalorder %s3314_s12, %s4234_s23 }
 0x93c   : > { %p3316_p5 = scmp.ne.s32.totalorder %s3314_s12, %s3315_s11  ;;  %p3321_p9 = scmp.lt.s32.totalorder %s3319_s8, %s3315_s11 }
 0x93e   : > { %p3317_p6 = pnand %p3316_p5, %p3588_p12  ;;  %p3322_p10 = por %p3321_p9, %p3320_p8 }
 0x940   : > { %p3318_p7 = pneg %p3317_p6 }
 0x942   : > { %p3323_p11 = pnand %p3322_p10, %p3318_p7 }
 0x944   : > { %3326 = shalt.err (!%p3323_p11)
}
 0x945   : > { %3022 = dma.vmem_to_hbm [thread:$0]  (%p3588_p12), %s2279_s15, 16, %s2281_s6, %s2254_s14  }
 0x946 PF: > { %s4235_s16 = sld [smem:[#allocation23_spill]] }
 0x947   : > { %s4236_s19 = sld [smem:[#allocation19_spill]] }
 0x94c   : > { %p3043_p13 = scmp.ge.s32.totalorder %s4235_s16, 2 }
 0x94d   : > { %s2292_s20 = sand.u32 1, %s4236_s19  }
 0x94e   : > { %p3036_p0 = pnand %p3043_p13, %p3598_p2  ;;  %s2293_s28 = scalar_lea.sflag [#allocation6], %s2292_s20 }
 0x950   : > { %p3037_p1 = pneg %p3036_p0 }
 0x952   : > { %3382 = dma.done.wait (%p3037_p1), %s2293_s28, 128  }
 0x953   : > { %3384 = vsyncadd (%p3037_p1), %s2293_s28, 4294967168  ;;  %s2303_s21 = scalar_lea.sflag [#allocation12], %s2292_s20 }
 0x954   : > { %3386 = dma.done.wait (%p3037_p1), %s2303_s21, 16  }
 0x955   : > { %3388 = vsyncadd (%p3037_p1), %s2303_s21, 4294967280  ;;  %s32_s19 = sadd.s32 1, %s4235_s16   ;;  %s4238_s1 = sld [smem:[#allocation20_spill]] }
 0x956   : > { %p29_p4 = scmp.ge.s32.totalorder %s32_s19, 6   ;;  %s4239_s11 = sld [smem:[#allocation27_spill]] }
 0x957   : > { %s4240_s22 = sld [smem:[#allocation21_spill]]  ;;  %s4245_s30 = smov %s3395_s10 }
 0x958   : > { %s4241_s14 = sld [smem:[#allocation26_spill]]  ;;  %s4247_s12 = smov %s3407_s13 }
 0x959   : > { %s4242_s16 = sld [smem:[#allocation22_spill]]  ;;  %s4249_s15 = smov %s3423_s17 }
 0x95a   : > { %s4243_s25 = sld [smem:[#allocation24_spill]] }
 0x95b   : > { %s4244_s18 = sld [smem:[#allocation25_spill]]  ;;  %s4246_s10 = smov %s4238_s1 }
 0x95c   :  { %31 = sbr.rel (!%p29_p4) target bundleno = 20 (0x14), region = 193 }
 0x95d   : > { %s4248_s13 = smov %s4240_s22 }
 0x960   : > { %s4250_s17 = smov %s4243_s25 }
 0x961   :  { %2308 = vsyncpa [#allocation5], 1 }
 0x962   :  { %2310 = vsyncpa [#allocation5 + $0x1], 1 }
 0x963   :  { %2311 = vsyncpa [#allocation8], 1 }
 0x964   :  { %2313 = vsyncpa [#allocation8 + $0x1], 1 }
 0x965   :  { %2314 = vsyncpa [#allocation6], 1 }
 0x966   :  { %2316 = vsyncpa [#allocation6 + $0x1], 1 }
 0x967   :  { %2317 = vsyncpa [#allocation12], 1 }
 0x968   :  { %2319 = vsyncpa [#allocation12 + $0x1], 1 }
 0x969   :  { %2320 = vsyncmov [#allocation3] }
 0x96c   :  { %s2321_s29 = vpop.sfrf %2320 }
 0x96d   :  { %p2911_p12 = scmp.ne.s32.totalorder %s2321_s29, 0 }
 0x96f   :  { %2325 = shalt.err (%p2911_p12)  }

</bundles_post_ra>
